<compile_context>
chip_gen: v6e
topology: v6e:2x2x1
jax: 0.10.0
libtpu: 0.0.40
codegen_flags: <defaults>
</compile_context>

<pallas_src>
import functools

import jax
import jax.numpy as jnp
from jax.experimental import pallas as pl
from jax.experimental.pallas import tpu as pltpu
from jax.scipy.linalg import block_diag


# -------------------------- Pallas kernel --------------------------------- #
def transformer_block_kernel(
    qkv_ref,                 # (1, H, S, 3D) bf16   head-major [q|k|v]
    qres_ref,                # (1, S, E) f32        original query (residual)
    bias_ref,                # (1, H, S, S) f32     additive mask bias (0 / -1e30)
    w3d_ref,                 # (H, 3D, 3D) bf16     fused per-head proj (scale folded)
    wo_ref,                  # (H, D, E) bf16       fc_out weight, head-major
    bo_ref,                  # (1, E) f32
    g1_ref, be1_ref,         # LayerNorm1 gamma/beta (1, E) f32
    w1_ref,                  # (E, FE*E) bf16
    bf1_ref,                 # (1, FE*E) f32
    w2_ref,                  # (FE*E, E) bf16
    bf2_ref,                 # (1, E) f32
    g2_ref, be2_ref,         # LayerNorm2 gamma/beta (1, E) f32
    o_ref,                   # (1, S, E) f32
    *, head_dim,
):
    D = head_dim
    qkv = qkv_ref[0]                                             # (H, S, 3D) bf16

    # Fused per-head Q/K/V projection: one batched MXU matmul over heads.
    qkvp = jnp.einsum('hsd,hde->hse', qkv, w3d_ref[...],
                      preferred_element_type=jnp.float32)        # (H, S, 3D) f32

    q3 = qkvp[..., 0 * D:1 * D].astype(jnp.bfloat16)             # (H, S, D)
    k3 = qkvp[..., 1 * D:2 * D].astype(jnp.bfloat16)             # (H, S, D)
    v3 = qkvp[..., 2 * D:3 * D].astype(jnp.bfloat16)             # (H, S, D)

    # Attention scores for all heads in one batched matmul (head = batch axis);
    # the 1/sqrt(embed_size) scale is already folded into the Q block of w3d.
    s = jnp.einsum('hqd,hkd->hqk', q3, k3,
                   preferred_element_type=jnp.float32)           # (H, S, S)
    s = s + bias_ref[0]                                          # additive mask

    # Softmax over keys (f32); reciprocal on the EUP slot.
    m = jnp.max(s, axis=-1, keepdims=True)
    e = jnp.exp(s - m)
    p = e * pl.reciprocal(jnp.sum(e, axis=-1, keepdims=True), approx=True)

    # (P @ V) and fc_out applied per head, reduced over heads (no concat/relayout).
    pv = jnp.einsum('hqk,hkd->hqd', p.astype(jnp.bfloat16), v3,
                    preferred_element_type=jnp.float32)          # (H, S, D)
    attn = jnp.einsum('hqd,hde->hqe', pv.astype(jnp.bfloat16), wo_ref[...],
                      preferred_element_type=jnp.float32)        # (H, S, E)
    attn = jnp.sum(attn, axis=0) + bo_ref[...]                   # (S, E)

    # --- residual + LayerNorm1 (f32) ---
    x = attn + qres_ref[0]
    mu = jnp.mean(x, axis=-1, keepdims=True)
    var = jnp.mean((x - mu) ** 2, axis=-1, keepdims=True)
    x = (x - mu) * jax.lax.rsqrt(var + 1e-5) * g1_ref[...] + be1_ref[...]

    # (dropout = identity at inference)
    # TODO(synk): training-mode dropout (pltpu.prng_*) not implemented.

    # --- feed-forward: Linear -> LeakyReLU(0.05) -> Linear (bf16 matmuls) ---
    h1 = jnp.dot(x.astype(jnp.bfloat16), w1_ref[...],
                 preferred_element_type=jnp.float32) + bf1_ref[...]
    h1 = jnp.where(h1 >= 0, h1, 0.05 * h1)
    ff = jnp.dot(h1.astype(jnp.bfloat16), w2_ref[...],
                 preferred_element_type=jnp.float32) + bf2_ref[...]

    # --- residual + LayerNorm2 (f32) ---
    y = ff + x
    mu2 = jnp.mean(y, axis=-1, keepdims=True)
    var2 = jnp.mean((y - mu2) ** 2, axis=-1, keepdims=True)
    o_ref[0] = (y - mu2) * jax.lax.rsqrt(var2 + 1e-5) * g2_ref[...] + be2_ref[...]


# ---------------------------- wrapper -------------------------------------- #
def transformer_block(value, key, query, mask, params, *, heads):
    """value/key/query: (N, S, E) f32, mask: broadcastable to (N, H, S, S); 0 = masked."""
    N, S, E = query.shape
    D = E // heads
    FE_E = params["w1"].shape[0]                     # forward_expansion * E
    bf16, f32 = jnp.bfloat16, jnp.float32

    # Head-major [q|k|v] activations: (N, H, S, 3D), bf16 for the MXU.
    def to_hm(x):
        return x.reshape(N, S, heads, D).transpose(0, 2, 1, 3)   # (N, H, S, D)
    qkv_hm = jnp.concatenate([to_hm(query), to_hm(key), to_hm(value)],
                             axis=-1).astype(bf16)               # (N, H, S, 3D)

    # Fused per-head projection weight (shared across heads), scale folded into Q.
    scale = 1.0 / (float(E) ** 0.5)       # reference divides by sqrt(embed_size)
    w3d = block_diag(params["wq"].T * scale, params["wk"].T, params["wv"].T)
    w3d = jnp.broadcast_to(w3d.astype(bf16)[None], (heads, 3 * D, 3 * D))

    # fc_out weight in head-major form: out = sum_h pv_h @ wo_hde[h] + bo.
    wo_hde = params["wo"].T.reshape(heads, D, E).astype(bf16)    # (H, D, E)

    # Additive mask bias: 0 where kept, -1e30 where masked (no -inf NaN hazard).
    mask_b = jnp.broadcast_to(mask, (N, heads, S, S))
    bias = jnp.where(mask_b == 0, -1e30, 0.0).astype(f32)        # (N, H, S, S)

    w1_t = params["w1"].T.astype(bf16)                           # (E, FE*E)
    w2_t = params["w2"].T.astype(bf16)                           # (FE*E, E)
    row = lambda a: a.reshape(1, -1).astype(f32)

    full = lambda shape: pl.BlockSpec(shape, lambda n: (0,) * len(shape))
    kernel = functools.partial(transformer_block_kernel, head_dim=D)

    return pl.pallas_call(
        kernel,
        out_shape=jax.ShapeDtypeStruct((N, S, E), f32),
        grid=(N,),
        in_specs=[
            pl.BlockSpec((1, heads, S, 3 * D), lambda n: (n, 0, 0, 0)),  # qkv (head-major)
            pl.BlockSpec((1, S, E), lambda n: (n, 0, 0)),                # query residual
            pl.BlockSpec((1, heads, S, S), lambda n: (n, 0, 0, 0)),      # mask bias
            full((heads, 3 * D, 3 * D)),                                 # fused qkv proj
            full((heads, D, E)), full((1, E)),                           # fc_out W, b
            full((1, E)), full((1, E)),                                  # LN1 gamma, beta
            full((E, FE_E)), full((1, FE_E)),                            # FF W1^T, b1
            full((FE_E, E)), full((1, E)),                               # FF W2^T, b2
            full((1, E)), full((1, E)),                                  # LN2 gamma, beta
        ],
        out_specs=pl.BlockSpec((1, S, E), lambda n: (n, 0, 0)),
        compiler_params=pltpu.CompilerParams(
            dimension_semantics=("parallel",),
            vmem_limit_bytes=32 * 1024 * 1024,
        ),
    )(
        qkv_hm, query, bias,
        w3d, wo_hde, row(params["bo"]),
        row(params["g1"]), row(params["be1"]),
        w1_t, row(params["bf1"]), w2_t, row(params["bf2"]),
        row(params["g2"]), row(params["be2"]),
    )


# --------------------- pure-JAX reference (for checking) ------------------- #
def reference_block(value, key, query, mask, params, *, heads):
    N, S, E = query.shape
    D = E // heads

    def proj(x, w):  # per-head linear, bias-free (x @ w.T on each head chunk)
        xh = x.reshape(N, S, heads, D)
        return jnp.einsum("nshd,ed->nshe", xh, w)

    q = proj(query, params["wq"])
    k = proj(key, params["wk"])
    v = proj(value, params["wv"])

    att = jnp.einsum("nqhd,nkhd->nhqk", q, k) / (E ** 0.5)
    att = jnp.where(mask == 0, -jnp.inf, att)
    att = jax.nn.softmax(att, axis=3)
    out = jnp.einsum("nhql,nlhd->nqhd", att, v).reshape(N, S, E)
    out = out @ params["wo"].T + params["bo"]

    def ln(x, g, b):
        mu = jnp.mean(x, axis=-1, keepdims=True)
        var = jnp.mean((x - mu) ** 2, axis=-1, keepdims=True)
        return (x - mu) / jnp.sqrt(var + 1e-5) * g + b

    x = ln(out + query, params["g1"], params["be1"])
    h1 = x @ params["w1"].T + params["bf1"]
    h1 = jnp.where(h1 >= 0, h1, 0.05 * h1)
    ff = h1 @ params["w2"].T + params["bf2"]
    return ln(ff + x, params["g2"], params["be2"])


# --------------------------------- main ------------------------------------ #
if __name__ == "__main__":
    N, S, E, H, FE = 2, 16, 128, 4, 2          # E=128 -> lane-dense stores
    D = E // H

    key0 = jax.random.PRNGKey(0)
    ks = jax.random.split(key0, 16)

    params = {
        "wq": jax.random.normal(ks[0], (D, D), jnp.float32) * 0.1,
        "wk": jax.random.normal(ks[1], (D, D), jnp.float32) * 0.1,
        "wv": jax.random.normal(ks[2], (D, D), jnp.float32) * 0.1,
        "wo": jax.random.normal(ks[3], (E, E), jnp.float32) * 0.05,
        "bo": jax.random.normal(ks[4], (E,), jnp.float32) * 0.1,
        "g1": 1.0 + jax.random.normal(ks[5], (E,), jnp.float32) * 0.1,
        "be1": jax.random.normal(ks[6], (E,), jnp.float32) * 0.1,
        "w1": jax.random.normal(ks[7], (FE * E, E), jnp.float32) * 0.05,
        "bf1": jax.random.normal(ks[8], (FE * E,), jnp.float32) * 0.1,
        "w2": jax.random.normal(ks[9], (E, FE * E), jnp.float32) * 0.05,
        "bf2": jax.random.normal(ks[10], (E,), jnp.float32) * 0.1,
        "g2": 1.0 + jax.random.normal(ks[11], (E,), jnp.float32) * 0.1,
        "be2": jax.random.normal(ks[12], (E,), jnp.float32) * 0.1,
    }

    value = jax.random.normal(ks[13], (N, S, E), jnp.float32)
    key_a = jax.random.normal(ks[14], (N, S, E), jnp.float32)
    query = jax.random.normal(ks[15], (N, S, E), jnp.float32)

    # causal mask, broadcast to (N, H, S, S); 0 means "mask out"
    causal = jnp.tril(jnp.ones((S, S), jnp.int32))
    mask = jnp.broadcast_to(causal[None, None], (N, H, S, S))

    out = transformer_block(value, key_a, query, mask, params, heads=H)
    out = jax.block_until_ready(out)

    ref = reference_block(value, key_a, query, mask, params, heads=H)
    assert out.shape == (N, S, E)
    err = float(jnp.max(jnp.abs(out - ref)))
    # bf16 matmul operands + approx reciprocal vs. pure-f32 reference
    assert err < 5e-2, f"max abs err = {err}"

    print("KERNEL_OK")
</pallas_src>

<mosaic_0001>
module attributes {stable_mosaic.version = 11 : i64} {
  func.func @transformer_block_kernel(%arg0: i32, %arg1: memref<1x4x16x96xbf16, #tpu.memory_space<vmem>>, %arg2: memref<1x16x128xf32, #tpu.memory_space<vmem>>, %arg3: memref<1x4x16x16xf32, #tpu.memory_space<vmem>>, %arg4: memref<4x96x96xbf16, #tpu.memory_space<vmem>>, %arg5: memref<4x32x128xbf16, #tpu.memory_space<vmem>>, %arg6: memref<1x128xf32, #tpu.memory_space<vmem>>, %arg7: memref<1x128xf32, #tpu.memory_space<vmem>>, %arg8: memref<1x128xf32, #tpu.memory_space<vmem>>, %arg9: memref<128x256xbf16, #tpu.memory_space<vmem>>, %arg10: memref<1x256xf32, #tpu.memory_space<vmem>>, %arg11: memref<256x128xbf16, #tpu.memory_space<vmem>>, %arg12: memref<1x128xf32, #tpu.memory_space<vmem>>, %arg13: memref<1x128xf32, #tpu.memory_space<vmem>>, %arg14: memref<1x128xf32, #tpu.memory_space<vmem>>, %arg15: memref<1x16x128xf32, #tpu.memory_space<vmem>>) attributes {dimension_semantics = [#tpu.dimension_semantics<parallel>], iteration_bounds = array<i64: 2>, scalar_prefetch = 0 : i64, scratch_operands = 0 : i64, tpu.core_type = #tpu.core_type<tc>, window_params = [{transform_indices = @transform_0, window_bounds = array<i64: 1, 4, 16, 96>}, {transform_indices = @transform_1, window_bounds = array<i64: 1, 16, 128>}, {transform_indices = @transform_2, window_bounds = array<i64: 1, 4, 16, 16>}, {pipeline_mode = #tpu.pipeline_mode<synchronous>, transform_indices = @transform_3, window_bounds = array<i64: 4, 96, 96>}, {pipeline_mode = #tpu.pipeline_mode<synchronous>, transform_indices = @transform_4, window_bounds = array<i64: 4, 32, 128>}, {pipeline_mode = #tpu.pipeline_mode<synchronous>, transform_indices = @transform_5, window_bounds = array<i64: 1, 128>}, {pipeline_mode = #tpu.pipeline_mode<synchronous>, transform_indices = @transform_6, window_bounds = array<i64: 1, 128>}, {pipeline_mode = #tpu.pipeline_mode<synchronous>, transform_indices = @transform_7, window_bounds = array<i64: 1, 128>}, {pipeline_mode = #tpu.pipeline_mode<synchronous>, transform_indices = @transform_8, window_bounds = array<i64: 128, 256>}, {pipeline_mode = #tpu.pipeline_mode<synchronous>, transform_indices = @transform_9, window_bounds = array<i64: 1, 256>}, {pipeline_mode = #tpu.pipeline_mode<synchronous>, transform_indices = @transform_10, window_bounds = array<i64: 256, 128>}, {pipeline_mode = #tpu.pipeline_mode<synchronous>, transform_indices = @transform_11, window_bounds = array<i64: 1, 128>}, {pipeline_mode = #tpu.pipeline_mode<synchronous>, transform_indices = @transform_12, window_bounds = array<i64: 1, 128>}, {pipeline_mode = #tpu.pipeline_mode<synchronous>, transform_indices = @transform_13, window_bounds = array<i64: 1, 128>}, {transform_indices = @transform_14, window_bounds = array<i64: 1, 16, 128>}]} {
    %c0 = arith.constant 0 : index
    %c0_0 = arith.constant 0 : index
    %c0_1 = arith.constant 0 : index
    %c0_2 = arith.constant 0 : index
    %0 = vector.load %arg1[%c0, %c0_0, %c0_1, %c0_2] : memref<1x4x16x96xbf16, #tpu.memory_space<vmem>>, vector<1x4x16x96xbf16>
    %1 = vector.shape_cast %0 : vector<1x4x16x96xbf16> to vector<4x16x96xbf16>
    %c0_3 = arith.constant 0 : index
    %c0_4 = arith.constant 0 : index
    %c0_5 = arith.constant 0 : index
    %2 = vector.load %arg4[%c0_3, %c0_4, %c0_5] : memref<4x96x96xbf16, #tpu.memory_space<vmem>>, vector<4x96x96xbf16>
    "tpu.trace_start"() <{level = 10 : i32, message = "hsd,hde->hse"}> : () -> ()
    %cst = arith.constant dense<0.000000e+00> : vector<4x16x96xf32>
    %3 = tpu.matmul %1, %2, %cst {dimension_numbers = #tpu.dot_dimension_numbers<[2], [1], [1], [2], [0, 0, 0, 1, 1, 2], [0], [0]>} : vector<4x16x96xbf16>, vector<4x96x96xbf16>, vector<4x16x96xf32> -> vector<4x16x96xf32>
    "tpu.trace_stop"() : () -> ()
    %4 = vector.extract_strided_slice %3 {offsets = [0, 0, 0], sizes = [4, 16, 32], strides = [1, 1, 1]} : vector<4x16x96xf32> to vector<4x16x32xf32>
    %5 = arith.truncf %4 : vector<4x16x32xf32> to vector<4x16x32xbf16>
    %6 = vector.extract_strided_slice %3 {offsets = [0, 0, 32], sizes = [4, 16, 32], strides = [1, 1, 1]} : vector<4x16x96xf32> to vector<4x16x32xf32>
    %7 = arith.truncf %6 : vector<4x16x32xf32> to vector<4x16x32xbf16>
    %8 = vector.extract_strided_slice %3 {offsets = [0, 0, 64], sizes = [4, 16, 32], strides = [1, 1, 1]} : vector<4x16x96xf32> to vector<4x16x32xf32>
    %9 = arith.truncf %8 : vector<4x16x32xf32> to vector<4x16x32xbf16>
    "tpu.trace_start"() <{level = 10 : i32, message = "hqd,hkd->hqk"}> : () -> ()
    %cst_6 = arith.constant dense<0.000000e+00> : vector<4x16x16xf32>
    %10 = tpu.matmul %5, %7, %cst_6 {dimension_numbers = #tpu.dot_dimension_numbers<[2], [2], [1], [1], [0, 0, 0, 1, 1, 1], [0], [0]>} : vector<4x16x32xbf16>, vector<4x16x32xbf16>, vector<4x16x16xf32> -> vector<4x16x16xf32>
    "tpu.trace_stop"() : () -> ()
    %c0_7 = arith.constant 0 : index
    %c0_8 = arith.constant 0 : index
    %c0_9 = arith.constant 0 : index
    %c0_10 = arith.constant 0 : index
    %11 = vector.load %arg3[%c0_7, %c0_8, %c0_9, %c0_10] : memref<1x4x16x16xf32, #tpu.memory_space<vmem>>, vector<1x4x16x16xf32>
    %12 = vector.shape_cast %11 : vector<1x4x16x16xf32> to vector<4x16x16xf32>
    %13 = arith.addf %10, %12 : vector<4x16x16xf32>
    %cst_11 = arith.constant dense<0xFF800000> : vector<4x16xf32>
    %14 = vector.multi_reduction <maximumf>, %13, %cst_11 [2] : vector<4x16x16xf32> to vector<4x16xf32>
    %15 = vector.shape_cast %14 : vector<4x16xf32> to vector<4x16x1xf32>
    %16 = vector.broadcast %15 : vector<4x16x1xf32> to vector<4x16x16xf32>
    %17 = arith.subf %13, %16 : vector<4x16x16xf32>
    %18 = math.exp %17 : vector<4x16x16xf32>
    %cst_12 = arith.constant dense<0.000000e+00> : vector<4x16xf32>
    %19 = vector.multi_reduction <add>, %18, %cst_12 [2] : vector<4x16x16xf32> to vector<4x16xf32>
    %20 = vector.shape_cast %19 : vector<4x16xf32> to vector<4x16x1xf32>
    %21 = tpu.reciprocal %20 {approx = true} : vector<4x16x1xf32> -> vector<4x16x1xf32>
    %22 = vector.broadcast %21 : vector<4x16x1xf32> to vector<4x16x16xf32>
    %23 = arith.mulf %18, %22 : vector<4x16x16xf32>
    %24 = arith.truncf %23 : vector<4x16x16xf32> to vector<4x16x16xbf16>
    "tpu.trace_start"() <{level = 10 : i32, message = "hqk,hkd->hqd"}> : () -> ()
    %cst_13 = arith.constant dense<0.000000e+00> : vector<4x16x32xf32>
    %25 = tpu.matmul %24, %9, %cst_13 {dimension_numbers = #tpu.dot_dimension_numbers<[2], [1], [1], [2], [0, 0, 0, 1, 1, 2], [0], [0]>} : vector<4x16x16xbf16>, vector<4x16x32xbf16>, vector<4x16x32xf32> -> vector<4x16x32xf32>
    "tpu.trace_stop"() : () -> ()
    %26 = arith.truncf %25 : vector<4x16x32xf32> to vector<4x16x32xbf16>
    %c0_14 = arith.constant 0 : index
    %c0_15 = arith.constant 0 : index
    %c0_16 = arith.constant 0 : index
    %27 = vector.load %arg5[%c0_14, %c0_15, %c0_16] : memref<4x32x128xbf16, #tpu.memory_space<vmem>>, vector<4x32x128xbf16>
    "tpu.trace_start"() <{level = 10 : i32, message = "hqd,hde->hqe"}> : () -> ()
    %cst_17 = arith.constant dense<0.000000e+00> : vector<4x16x128xf32>
    %28 = tpu.matmul %26, %27, %cst_17 {dimension_numbers = #tpu.dot_dimension_numbers<[2], [1], [1], [2], [0, 0, 0, 1, 1, 2], [0], [0]>} : vector<4x16x32xbf16>, vector<4x32x128xbf16>, vector<4x16x128xf32> -> vector<4x16x128xf32>
    "tpu.trace_stop"() : () -> ()
    %cst_18 = arith.constant dense<0.000000e+00> : vector<16x128xf32>
    %29 = vector.multi_reduction <add>, %28, %cst_18 [0] : vector<4x16x128xf32> to vector<16x128xf32>
    %c0_19 = arith.constant 0 : index
    %c0_20 = arith.constant 0 : index
    %30 = vector.load %arg6[%c0_19, %c0_20] : memref<1x128xf32, #tpu.memory_space<vmem>>, vector<1x128xf32>
    %31 = vector.broadcast %30 : vector<1x128xf32> to vector<16x128xf32>
    %32 = arith.addf %29, %31 : vector<16x128xf32>
    %c0_21 = arith.constant 0 : index
    %c0_22 = arith.constant 0 : index
    %c0_23 = arith.constant 0 : index
    %33 = vector.load %arg2[%c0_21, %c0_22, %c0_23] : memref<1x16x128xf32, #tpu.memory_space<vmem>>, vector<1x16x128xf32>
    %34 = vector.shape_cast %33 : vector<1x16x128xf32> to vector<16x128xf32>
    %35 = arith.addf %32, %34 : vector<16x128xf32>
    %cst_24 = arith.constant dense<0.000000e+00> : vector<16xf32>
    %36 = vector.multi_reduction <add>, %35, %cst_24 [1] : vector<16x128xf32> to vector<16xf32>
    %37 = vector.shape_cast %36 : vector<16xf32> to vector<16x1xf32>
    %cst_25 = arith.constant 1.280000e+02 : f32
    %38 = vector.broadcast %cst_25 : f32 to vector<16x1xf32>
    %39 = arith.divf %37, %38 : vector<16x1xf32>
    %40 = vector.broadcast %39 : vector<16x1xf32> to vector<16x128xf32>
    %41 = arith.subf %35, %40 : vector<16x128xf32>
    %42 = arith.mulf %41, %41 : vector<16x128xf32>
    %cst_26 = arith.constant dense<0.000000e+00> : vector<16xf32>
    %43 = vector.multi_reduction <add>, %42, %cst_26 [1] : vector<16x128xf32> to vector<16xf32>
    %44 = vector.shape_cast %43 : vector<16xf32> to vector<16x1xf32>
    %cst_27 = arith.constant 1.280000e+02 : f32
    %45 = vector.broadcast %cst_27 : f32 to vector<16x1xf32>
    %46 = arith.divf %44, %45 : vector<16x1xf32>
    %47 = vector.broadcast %39 : vector<16x1xf32> to vector<16x128xf32>
    %48 = arith.subf %35, %47 : vector<16x128xf32>
    %cst_28 = arith.constant 9.99999974E-6 : f32
    %49 = vector.broadcast %cst_28 : f32 to vector<16x1xf32>
    %50 = arith.addf %46, %49 : vector<16x1xf32>
    %51 = math.rsqrt %50 : vector<16x1xf32>
    %52 = vector.broadcast %51 : vector<16x1xf32> to vector<16x128xf32>
    %53 = arith.mulf %48, %52 : vector<16x128xf32>
    %c0_29 = arith.constant 0 : index
    %c0_30 = arith.constant 0 : index
    %54 = vector.load %arg7[%c0_29, %c0_30] : memref<1x128xf32, #tpu.memory_space<vmem>>, vector<1x128xf32>
    %55 = vector.broadcast %54 : vector<1x128xf32> to vector<16x128xf32>
    %56 = arith.mulf %53, %55 : vector<16x128xf32>
    %c0_31 = arith.constant 0 : index
    %c0_32 = arith.constant 0 : index
    %57 = vector.load %arg8[%c0_31, %c0_32] : memref<1x128xf32, #tpu.memory_space<vmem>>, vector<1x128xf32>
    %58 = vector.broadcast %57 : vector<1x128xf32> to vector<16x128xf32>
    %59 = arith.addf %56, %58 : vector<16x128xf32>
    %60 = arith.truncf %59 : vector<16x128xf32> to vector<16x128xbf16>
    %c0_33 = arith.constant 0 : index
    %c0_34 = arith.constant 0 : index
    %61 = vector.load %arg9[%c0_33, %c0_34] : memref<128x256xbf16, #tpu.memory_space<vmem>>, vector<128x256xbf16>
    %cst_35 = arith.constant dense<0.000000e+00> : vector<16x256xf32>
    %62 = tpu.matmul %60, %61, %cst_35 {dimension_numbers = #tpu.dot_dimension_numbers<[1], [0], [0], [1], [0, 0, 1, 1], [], []>} : vector<16x128xbf16>, vector<128x256xbf16>, vector<16x256xf32> -> vector<16x256xf32>
    %c0_36 = arith.constant 0 : index
    %c0_37 = arith.constant 0 : index
    %63 = vector.load %arg10[%c0_36, %c0_37] : memref<1x256xf32, #tpu.memory_space<vmem>>, vector<1x256xf32>
    %64 = vector.broadcast %63 : vector<1x256xf32> to vector<16x256xf32>
    %65 = arith.addf %62, %64 : vector<16x256xf32>
    %cst_38 = arith.constant 0.000000e+00 : f32
    %66 = vector.broadcast %cst_38 : f32 to vector<16x256xf32>
    %67 = arith.cmpf oge, %65, %66 : vector<16x256xf32>
    %cst_39 = arith.constant 5.000000e-02 : f32
    %68 = vector.broadcast %cst_39 : f32 to vector<16x256xf32>
    %69 = arith.mulf %68, %65 : vector<16x256xf32>
    %70 = arith.select %67, %65, %69 : vector<16x256xi1>, vector<16x256xf32>
    %71 = arith.truncf %70 : vector<16x256xf32> to vector<16x256xbf16>
    %c0_40 = arith.constant 0 : index
    %c0_41 = arith.constant 0 : index
    %72 = vector.load %arg11[%c0_40, %c0_41] : memref<256x128xbf16, #tpu.memory_space<vmem>>, vector<256x128xbf16>
    %cst_42 = arith.constant dense<0.000000e+00> : vector<16x128xf32>
    %73 = tpu.matmul %71, %72, %cst_42 {dimension_numbers = #tpu.dot_dimension_numbers<[1], [0], [0], [1], [0, 0, 1, 1], [], []>} : vector<16x256xbf16>, vector<256x128xbf16>, vector<16x128xf32> -> vector<16x128xf32>
    %c0_43 = arith.constant 0 : index
    %c0_44 = arith.constant 0 : index
    %74 = vector.load %arg12[%c0_43, %c0_44] : memref<1x128xf32, #tpu.memory_space<vmem>>, vector<1x128xf32>
    %75 = vector.broadcast %74 : vector<1x128xf32> to vector<16x128xf32>
    %76 = arith.addf %73, %75 : vector<16x128xf32>
    %77 = arith.addf %76, %59 : vector<16x128xf32>
    %cst_45 = arith.constant dense<0.000000e+00> : vector<16xf32>
    %78 = vector.multi_reduction <add>, %77, %cst_45 [1] : vector<16x128xf32> to vector<16xf32>
    %79 = vector.shape_cast %78 : vector<16xf32> to vector<16x1xf32>
    %cst_46 = arith.constant 1.280000e+02 : f32
    %80 = vector.broadcast %cst_46 : f32 to vector<16x1xf32>
    %81 = arith.divf %79, %80 : vector<16x1xf32>
    %82 = vector.broadcast %81 : vector<16x1xf32> to vector<16x128xf32>
    %83 = arith.subf %77, %82 : vector<16x128xf32>
    %84 = arith.mulf %83, %83 : vector<16x128xf32>
    %cst_47 = arith.constant dense<0.000000e+00> : vector<16xf32>
    %85 = vector.multi_reduction <add>, %84, %cst_47 [1] : vector<16x128xf32> to vector<16xf32>
    %86 = vector.shape_cast %85 : vector<16xf32> to vector<16x1xf32>
    %cst_48 = arith.constant 1.280000e+02 : f32
    %87 = vector.broadcast %cst_48 : f32 to vector<16x1xf32>
    %88 = arith.divf %86, %87 : vector<16x1xf32>
    %89 = vector.broadcast %81 : vector<16x1xf32> to vector<16x128xf32>
    %90 = arith.subf %77, %89 : vector<16x128xf32>
    %cst_49 = arith.constant 9.99999974E-6 : f32
    %91 = vector.broadcast %cst_49 : f32 to vector<16x1xf32>
    %92 = arith.addf %88, %91 : vector<16x1xf32>
    %93 = math.rsqrt %92 : vector<16x1xf32>
    %94 = vector.broadcast %93 : vector<16x1xf32> to vector<16x128xf32>
    %95 = arith.mulf %90, %94 : vector<16x128xf32>
    %c0_50 = arith.constant 0 : index
    %c0_51 = arith.constant 0 : index
    %96 = vector.load %arg13[%c0_50, %c0_51] : memref<1x128xf32, #tpu.memory_space<vmem>>, vector<1x128xf32>
    %97 = vector.broadcast %96 : vector<1x128xf32> to vector<16x128xf32>
    %98 = arith.mulf %95, %97 : vector<16x128xf32>
    %c0_52 = arith.constant 0 : index
    %c0_53 = arith.constant 0 : index
    %99 = vector.load %arg14[%c0_52, %c0_53] : memref<1x128xf32, #tpu.memory_space<vmem>>, vector<1x128xf32>
    %100 = vector.broadcast %99 : vector<1x128xf32> to vector<16x128xf32>
    %101 = arith.addf %98, %100 : vector<16x128xf32>
    %c0_54 = arith.constant 0 : index
    %c0_55 = arith.constant 0 : index
    %c0_56 = arith.constant 0 : index
    %102 = vector.load %arg15[%c0_54, %c0_55, %c0_56] : memref<1x16x128xf32, #tpu.memory_space<vmem>>, vector<1x16x128xf32>
    %103 = vector.shape_cast %102 : vector<1x16x128xf32> to vector<16x128xf32>
    %104 = vector.shape_cast %101 : vector<16x128xf32> to vector<1x16x128xf32>
    tpu.vector_store %arg15[%c0_54, %c0_55, %c0_56], %104 {strides = array<i32>} : memref<1x16x128xf32, #tpu.memory_space<vmem>>, vector<1x16x128xf32>,
    return
  }
  func.func @transform_0(%arg0: i32) -> (i32, i32, i32, i32) {
    %c0_i32 = arith.constant 0 : i32
    %c0_i32_0 = arith.constant 0 : i32
    %c0_i32_1 = arith.constant 0 : i32
    %c0_i32_2 = arith.constant 0 : i32
    return %arg0, %c0_i32, %c0_i32_0, %c0_i32_1 : i32, i32, i32, i32
  }
  func.func @transform_1(%arg0: i32) -> (i32, i32, i32) {
    %c0_i32 = arith.constant 0 : i32
    %c0_i32_0 = arith.constant 0 : i32
    %c0_i32_1 = arith.constant 0 : i32
    return %arg0, %c0_i32, %c0_i32_0 : i32, i32, i32
  }
  func.func @transform_2(%arg0: i32) -> (i32, i32, i32, i32) {
    %c0_i32 = arith.constant 0 : i32
    %c0_i32_0 = arith.constant 0 : i32
    %c0_i32_1 = arith.constant 0 : i32
    %c0_i32_2 = arith.constant 0 : i32
    return %arg0, %c0_i32, %c0_i32_0, %c0_i32_1 : i32, i32, i32, i32
  }
  func.func @transform_3(%arg0: i32) -> (i32, i32, i32) {
    %c0_i32 = arith.constant 0 : i32
    %c0_i32_0 = arith.constant 0 : i32
    %c0_i32_1 = arith.constant 0 : i32
    %c0_i32_2 = arith.constant 0 : i32
    return %c0_i32, %c0_i32_0, %c0_i32_1 : i32, i32, i32
  }
  func.func @transform_4(%arg0: i32) -> (i32, i32, i32) {
    %c0_i32 = arith.constant 0 : i32
    %c0_i32_0 = arith.constant 0 : i32
    %c0_i32_1 = arith.constant 0 : i32
    %c0_i32_2 = arith.constant 0 : i32
    return %c0_i32, %c0_i32_0, %c0_i32_1 : i32, i32, i32
  }
  func.func @transform_5(%arg0: i32) -> (i32, i32) {
    %c0_i32 = arith.constant 0 : i32
    %c0_i32_0 = arith.constant 0 : i32
    %c0_i32_1 = arith.constant 0 : i32
    return %c0_i32, %c0_i32_0 : i32, i32
  }
  func.func @transform_6(%arg0: i32) -> (i32, i32) {
    %c0_i32 = arith.constant 0 : i32
    %c0_i32_0 = arith.constant 0 : i32
    %c0_i32_1 = arith.constant 0 : i32
    return %c0_i32, %c0_i32_0 : i32, i32
  }
  func.func @transform_7(%arg0: i32) -> (i32, i32) {
    %c0_i32 = arith.constant 0 : i32
    %c0_i32_0 = arith.constant 0 : i32
    %c0_i32_1 = arith.constant 0 : i32
    return %c0_i32, %c0_i32_0 : i32, i32
  }
  func.func @transform_8(%arg0: i32) -> (i32, i32) {
    %c0_i32 = arith.constant 0 : i32
    %c0_i32_0 = arith.constant 0 : i32
    %c0_i32_1 = arith.constant 0 : i32
    return %c0_i32, %c0_i32_0 : i32, i32
  }
  func.func @transform_9(%arg0: i32) -> (i32, i32) {
    %c0_i32 = arith.constant 0 : i32
    %c0_i32_0 = arith.constant 0 : i32
    %c0_i32_1 = arith.constant 0 : i32
    return %c0_i32, %c0_i32_0 : i32, i32
  }
  func.func @transform_10(%arg0: i32) -> (i32, i32) {
    %c0_i32 = arith.constant 0 : i32
    %c0_i32_0 = arith.constant 0 : i32
    %c0_i32_1 = arith.constant 0 : i32
    return %c0_i32, %c0_i32_0 : i32, i32
  }
  func.func @transform_11(%arg0: i32) -> (i32, i32) {
    %c0_i32 = arith.constant 0 : i32
    %c0_i32_0 = arith.constant 0 : i32
    %c0_i32_1 = arith.constant 0 : i32
    return %c0_i32, %c0_i32_0 : i32, i32
  }
  func.func @transform_12(%arg0: i32) -> (i32, i32) {
    %c0_i32 = arith.constant 0 : i32
    %c0_i32_0 = arith.constant 0 : i32
    %c0_i32_1 = arith.constant 0 : i32
    return %c0_i32, %c0_i32_0 : i32, i32
  }
  func.func @transform_13(%arg0: i32) -> (i32, i32) {
    %c0_i32 = arith.constant 0 : i32
    %c0_i32_0 = arith.constant 0 : i32
    %c0_i32_1 = arith.constant 0 : i32
    return %c0_i32, %c0_i32_0 : i32, i32
  }
  func.func @transform_14(%arg0: i32) -> (i32, i32, i32) {
    %c0_i32 = arith.constant 0 : i32
    %c0_i32_0 = arith.constant 0 : i32
    %c0_i32_1 = arith.constant 0 : i32
    return %arg0, %c0_i32, %c0_i32_0 : i32, i32, i32
  }
}

</mosaic_0001>

<bundles_post_ra>
// kernel: tpu_custom_call.1
= control target key start
LH: loop header
LB: loop body
LE: loop exit
PB: predicated region body
PF: predicated region fallthrough
CT: control target
= control target key end

     0   :  { %s3803_s0 = inlined_call_operand.hbm [shape: bf16[2,4,16,96], index: 0, kind: input, shape index: {}]   ;;  %s3804_s1 = inlined_call_operand.hbm [shape: f32[2,16,128], index: 1, kind: input, shape index: {}]   ;;  %s3805_s2 = inlined_call_operand.hbm [shape: f32[2,4,16,16], index: 2, kind: input, shape index: {}]   ;;  %s3806_s3 = inlined_call_operand.hbm [shape: bf16[4,96,96], index: 3, kind: input, shape index: {}]   ;;  %s3807_s4 = inlined_call_operand.hbm [shape: bf16[4,32,128], index: 4, kind: input, shape index: {}]   ;;  %s3808_s5 = inlined_call_operand.vmem [shape: f32[1,128], index: 5, kind: input, shape index: {}]   ;;  %s3809_s6 = inlined_call_operand.vmem [shape: f32[1,128], index: 6, kind: input, shape index: {}]   ;;  %s3810_s7 = inlined_call_operand.vmem [shape: f32[1,128], index: 7, kind: input, shape index: {}]   ;;  %s3811_s8 = inlined_call_operand.hbm [shape: bf16[128,256], index: 8, kind: input, shape index: {}]   ;;  %s3812_s9 = inlined_call_operand.vmem [shape: f32[1,256], index: 9, kind: input, shape index: {}]   ;;  %s3813_s10 = inlined_call_operand.hbm [shape: bf16[256,128], index: 10, kind: input, shape index: {}]   ;;  %s3814_s11 = inlined_call_operand.vmem [shape: f32[1,128], index: 11, kind: input, shape index: {}]   ;;  %s3815_s12 = inlined_call_operand.vmem [shape: f32[1,128], index: 12, kind: input, shape index: {}]   ;;  %s3816_s13 = inlined_call_operand.vmem [shape: f32[1,128], index: 13, kind: input, shape index: {}]   ;;  %s3817_s14 = inlined_call_operand.hbm [shape: f32[2,16,128], index: 14, kind: output, shape index: {}]  }
   0x1   :  { %3841 = sst [smem:[#allocation26_spill]] %s3804_s1 }
   0x2   :  { %3842 = sst [smem:[#allocation27_spill]] %s3806_s3 }
   0x3   :  { %3843 = sst [smem:[#allocation28_spill]] %s3807_s4 }
   0x4   :  { %3844 = sst [smem:[#allocation29_spill]] %s3811_s8 }
   0x5   :  { %3845 = sst [smem:[#allocation30_spill]] %s3813_s10 }
   0x6   :  { %3846 = sst [smem:[#allocation31_spill]] %s3814_s11 }
   0x7   :  { %3847 = sst [smem:[#allocation32_spill]] %s3815_s12 }
   0x8   :  { %3848 = sst [smem:[#allocation33_spill]] %s3816_s13 }
   0x9   :  { %3849 = sst [smem:[#allocation34_spill]] %s3817_s14 }
   0xa   :  { %19 = vsyncpa [#allocation3], 0 }
   0xb   :  { %21 = vsyncpa [#allocation3 + $0x1], 0 }
   0xc   :  { %22 = vsyncpa [#allocation6], 0 }
   0xd   :  { %24 = vsyncpa [#allocation6 + $0x1], 0 }
   0xe   :  { %25 = vsyncpa [#allocation9], 0 }
   0xf   :  { %26 = vsyncpa [#allocation12], 0 }
  0x10   :  { %27 = vsyncpa [#allocation4], 0 }
  0x11   :  { %29 = vsyncpa [#allocation4 + $0x1], 0  ;;  %s3301_s29 = smov 0   ;;  %s3303_s30 = smov 0  }
  0x12   :  { %s3305_s15 = smov 0   ;;  %s3307_s16 = smov 0  }
  0x13 LB: > { %3850 = sst [smem:[#allocation20_spill]] %s3193_s29  ;;  %s3322_s17 = sadd.s32 4294967295, %s3205_s16   ;;  %s3205_s16 = sphi %s3307_s16, %s3891_s16   ;;  %s3201_s15 = sphi %s3305_s15, %s3893_s15   ;;  %s3197_s30 = sphi %s3303_s30, %s3895_s30   ;;  %s3193_s29 = sphi %s3301_s29, %s3894_s29  }
  0x14   : > { %3851 = sst [smem:[#allocation21_spill]] %s3201_s15  ;;  %s2371_s18 = sadd.s32 4294967294, %s3205_s16  }
  0x15   : > { %p55_p0 = scmp.ne.s32.totalorder %s3197_s30, %s3193_s29  ;;  %p3834_p1 = scmp.eq.s32.totalorder %s3322_s17, 0 }
  0x16   : > { %p362_p2 = scmp.eq.s32.totalorder %s3322_s17, 1  ;;  %p368_p3 = scmp.eq.s32.totalorder %s2371_s18, 1 }
  0x17   : > { %p3331_p4 = por %p3834_p1, %p55_p0  ;;  %p2372_p5 = scmp.ge.s32.totalorder %s3205_s16, 1 }
  0x18   : > { %p3336_p6 = por %p368_p3, %p55_p0  ;;  %p375_p7 = scmp.lt.s32.totalorder %s3205_s16, 3 }
  0x19   : > { %s3852_s19 = scalar_select %p3331_p4, 1, 0 }
  0x1a   : > { %s3853_s20 = scalar_select %p3336_p6, 1, 0 }
  0x1b   : > { %p3341_p8 = pnand %p2372_p5, %p375_p7  ;;  %s3207_s22 = smov [#allocation8]  }
  0x1c   : > { %3854 = sst [smem:[#allocation22_spill]] %s3853_s20  ;;  %s387_s23 = sshll.u32 %s3207_s22, 4  ;;  %s388_s23 = int_to_ptr.vmem [resolvable:$true] %s387_s23 }
  0x1d   : > { %s3855_s21 = scalar_select %p3341_p8, 1, 0 }
  0x1e   : > { %p2741_p9 = pneg %p3341_p8  ;;  %s3208_s25 = smov [#allocation11]  }
  0x1f   : > { %s422_s26 = sshll.u32 %s3208_s25, 4  ;;  %s2952_s27 = scalar_lea.vmem %s388_s23, 3072  ;;  %s423_s26 = int_to_ptr.vmem [resolvable:$true] %s422_s26 }
  0x20   : > { %p3350_p11 = pnand %p2741_p9, %p3834_p1  ;;  %p2953_p13 = scmp.ne.s32.totalorder %s388_s23, %s2952_s27 }
  0x21   : > { %p2960_p5 = scmp.lt.s32.totalorder %s388_s23, %s388_s23  ;;  %p2961_p7 = scmp.lt.s32.totalorder %s2952_s27, %s2952_s27 }
  0x22   : > { %s3856_s24 = scalar_select %p3350_p11, 1, 0 }
  0x23   : > { %p3835_p12 = pneg %p3350_p11  ;;  %p2962_p10 = por %p2961_p7, %p2960_p5 }
  0x25   : > { %p2955_p0 = pnand %p2953_p13, %p3835_p12 }
  0x27   : > { %p2956_p3 = pneg %p2955_p0 }
  0x29   : > { %p2963_p9 = pnand %p2962_p10, %p2956_p3 }
  0x2b   : > { %2966 = shalt.err (!%p2963_p9)
}
  0x2c   : > { %s3819_s28 = smov 64   ;;  %s3821_s18 = smov 4  }
  0x2d   : > { %s3857_s3 = sld [smem:[#allocation27_spill]]  ;;  %s2978_s20 = scalar_lea.vmem %s423_s26, 2048 }
  0x2e   : > { %p2979_p13 = scmp.ne.s32.totalorder %s423_s26, %s2978_s20  ;;  %p2986_p10 = scmp.lt.s32.totalorder %s423_s26, %s423_s26 }
  0x2f   : > { %p2987_p3 = scmp.lt.s32.totalorder %s2978_s20, %s2978_s20 }
  0x30   : > { %p2981_p0 = pnand %p2979_p13, %p3835_p12 }
  0x31   : > { %p2988_p7 = por %p2987_p3, %p2986_p10 }
  0x32   : > { %p2982_p5 = pneg %p2981_p0 }
  0x33   : > { %2744 = dma.hbm_to_vmem [thread:$0]  (!%p3350_p11), %s3857_s3, 3072, %s388_s23, [#allocation9], %s3819_s28, %s3819_s28, %s3821_s18  }
  0x34   : > { %p2989_p9 = pnand %p2988_p7, %p2982_p5 }
  0x36   : > { %2992 = shalt.err (!%p2989_p9)
}
  0x37   : > { %s3824_s27 = smov 128   ;;  %s3826_s23 = smov 8  }
  0x38   : > { %s3858_s8 = sld [smem:[#allocation29_spill]]  ;;  %s3379_s25 = sadd.s32 1, %s3205_s16  }
  0x39   : > { %3859 = sst [smem:[#allocation23_spill]] %s3379_s25  ;;  %s39_s28 = ssub.s32 %s3205_s16, %s3379_s25 }
  0x3a   : > { %p40_p13 = scmp.eq.s32.totalorder %s39_s28, 0  ;;  %s42_s18 = sadd.s32 1, %s3201_s15 }
  0x3b   : > { %p49_p0 = scmp.ne.s32.totalorder %s3201_s15, %s3197_s30  ;;  %p50_p5 = scmp.eq.s32.totalorder %s3205_s16, 0 }
  0x3c   : > { %s3388_s3 = scalar_select %p40_p13, %s3201_s15, %s42_s18  }
  0x3d   : > { %p51_p10 = por %p50_p5, %p49_p0  ;;  %p3392_p3 = por %p362_p2, %p49_p0 }
  0x3e   : > { %2750 = dma.hbm_to_vmem [thread:$0]  (!%p3350_p11), %s3858_s8, 2048, %s423_s26, [#allocation12], %s3824_s27, %s3824_s27, %s3826_s23  }
  0x3f   : > { %3860 = sst [smem:[#allocation24_spill]] %s3388_s3  ;;  %p2772_p7 = scmp.lt.s32.totalorder %s3205_s16, 2 }
  0x40   : > { %s3861_s29 = scalar_select %p3392_p3, 1, 0 }
  0x41   : > { %s3398_s20 = sand.u32 1, %s3201_s15   ;;  %s482_s26 = sand.u32 1, %s3205_s16  }
  0x42   : > { %3862 = sst [smem:[#allocation25_spill]] %s3861_s29  ;;  %s2381_s22 = sshll.u32 %s3398_s20, 4 }
  0x43   : > { %p3402_p9 = pnand %p2772_p7, %p51_p10  ;;  %s2492_s28 = sshll.u32 %s3205_s16, 8 }
  0x44   : > { %s3864_s1 = sld [smem:[#allocation26_spill]]  ;;  %s486_s3 = scalar_lea.vmem [#allocation5], %s2381_s22 }
  0x45   : > { %s493_s15 = sshll.u32 %s486_s3, 4  ;;  %s3213_s25 = smov [#allocation10]   ;;  %s3412_s15 = int_to_ptr.vmem [resolvable:$true] %s493_s15 }
  0x46   : > { %s3414_s14 = sshll.u32 %s3213_s25, 4  ;;  %s3416_s29 = scalar_lea.sflag [#allocation6], %s482_s26  ;;  %s401_s14 = int_to_ptr.vmem [resolvable:$true] %s3414_s14 }
  0x47   : > { %p3422_p13 = pneg %p3402_p9 }
  0x4a   : > { %s3410_s8 = scalar_lea.hbm %s3864_s1, %s2492_s28  ;;  %s2998_s22 = scalar_lea.hbm %s3864_s1, 512 }
  0x4b   : > { %s2993_s13 = scalar_lea.hbm %s3410_s8, 256  ;;  %p2999_p10 = scmp.lt.s32.totalorder %s3410_s8, %s3864_s1 }
  0x4c   : > { %p2994_p2 = scmp.ne.s32.totalorder %s3410_s8, %s2993_s13  ;;  %p3000_p7 = scmp.lt.s32.totalorder %s2998_s22, %s2993_s13 }
  0x4e   : > { %p2996_p0 = pnand %p3422_p13, %p2994_p2  ;;  %p3001_p1 = por %p3000_p7, %p2999_p10 }
  0x50   : > { %p2997_p5 = pneg %p2996_p0 }
  0x52   : > { %p3002_p12 = pnand %p3001_p1, %p2997_p5 }
  0x54   : > { %3005 = shalt.err (!%p3002_p12)
}
  0x55   : > { %s3006_s26 = scalar_lea.vmem %s3412_s15, 256  ;;  %s3214_s18 = smov [#allocation5]  }
  0x56   : > { %p3007_p6 = scmp.ne.s32.totalorder %s3412_s15, %s3006_s26  ;;  %s3011_s23 = sshll.u32 %s3214_s18, 4  ;;  %s3012_s23 = int_to_ptr.vmem [resolvable:$false] %s3011_s23 }
  0x57   : > { %s3013_s3 = scalar_lea.vmem %s3012_s23, 512  ;;  %p3014_p3 = scmp.lt.s32.totalorder %s3412_s15, %s3012_s23 }
  0x58   : > { %p3009_p2 = pnand %p3007_p6, %p3422_p13  ;;  %p3015_p4 = scmp.lt.s32.totalorder %s3013_s3, %s3006_s26 }
  0x5a   : > { %p3010_p0 = pneg %p3009_p2  ;;  %p3016_p8 = por %p3015_p4, %p3014_p3 }
  0x5c   : > { %p3017_p11 = pnand %p3016_p8, %p3010_p0 }
  0x5e   : > { %3020 = shalt.err (!%p3017_p11)
}
  0x5f   : > { %s3866_s13 = smov 8   ;;  %s3867_s22 = smov 128  }
  0x60   : > { %2760 = dma.hbm_to_vmem [thread:$0]  (!%p3402_p9), %s3410_s8, 256, %s3412_s15, %s3416_s29, %s3867_s22, %s3867_s22, %s3866_s13  }
  0x61   : > { %s3032_s28 = scalar_lea.vmem %s401_s14, 1024  ;;  %p3868_p6 = scmp.ne.s32.totalorder %s3856_s24, 0 }
  0x62   : > { %p3033_p1 = scmp.ne.s32.totalorder %s401_s14, %s3032_s28  ;;  %p3040_p8 = scmp.lt.s32.totalorder %s401_s14, %s401_s14 }
  0x63   : > { %p3869_p12 = pneg %p3868_p6  ;;  %p3041_p11 = scmp.lt.s32.totalorder %s3032_s28, %s3032_s28 }
  0x65   : > { %p3035_p5 = pnand %p3033_p1, %p3869_p12  ;;  %p3042_p3 = por %p3041_p11, %p3040_p8 }
  0x67   : > { %p3036_p4 = pneg %p3035_p5 }
  0x69   : > { %p3043_p10 = pnand %p3042_p3, %p3036_p4 }
  0x6b   : > { %3046 = shalt.err (!%p3043_p10)
}
  0x6c   : > { %s3870_s25 = smov 4   ;;  %s3871_s26 = smov 64  }
  0x6d   : > { %s3872_s4 = sld [smem:[#allocation28_spill]]  ;;  %s3215_s8 = smov [#allocation13]  }
  0x6e   : > { %s438_s15 = sshll.u32 %s3215_s8, 4  ;;  %s2378_s3 = sshll.u32 %s3398_s20, 5  ;;  %s439_s15 = int_to_ptr.vmem [resolvable:$true] %s438_s15 }
  0x6f   : > { %s3058_s1 = scalar_lea.vmem %s439_s15, 2048  ;;  %p3873_p2 = pmov %p3869_p12 }
  0x70   : > { %p3059_p7 = scmp.ne.s32.totalorder %s439_s15, %s3058_s1  ;;  %p3066_p12 = scmp.lt.s32.totalorder %s439_s15, %s439_s15 }
  0x71   : > { %p3067_p5 = scmp.lt.s32.totalorder %s3058_s1, %s3058_s1 }
  0x72   : > { %p3061_p0 = pnand %p3059_p7, %p3873_p2 }
  0x73   : > { %2747 = dma.hbm_to_vmem [thread:$0]  (!%p3868_p6), %s3872_s4, 1024, %s401_s14, [#allocation9], %s3871_s26, %s3871_s26, %s3870_s25  }
  0x74   : > { %p3062_p1 = pneg %p3061_p0  ;;  %p3068_p4 = por %p3067_p5, %p3066_p12 }
  0x76   : > { %p3069_p8 = pnand %p3068_p4, %p3062_p1 }
  0x78   : > { %3072 = shalt.err (!%p3069_p8)
}
  0x79   : > { %s3874_s10 = sld [smem:[#allocation30_spill]]  ;;  %s2491_s18 = sshll.u32 %s3205_s16, 9 }
  0x7a   : > { %s3476_s1 = scalar_lea.hbm %s3803_s0, %s2491_s18  ;;  %s465_s24 = scalar_lea.vmem [#allocation2], %s2378_s3 }
  0x7b   : > { %s472_s4 = sshll.u32 %s465_s24, 4  ;;  %s2384_s11 = sshll.u32 %s3398_s20, 6  ;;  %s3478_s4 = int_to_ptr.vmem [resolvable:$true] %s472_s4 }
  0x7c   : > { %s462_s14 = scalar_lea.sflag [#allocation3], %s3398_s20  ;;  %s3073_s28 = scalar_lea.hbm %s3476_s1, 512 }
  0x7d   : > { %p3074_p11 = scmp.ne.s32.totalorder %s3476_s1, %s3073_s28  ;;  %s3078_s23 = scalar_lea.hbm %s3803_s0, 1024 }
  0x7e   : > { %p3079_p10 = scmp.lt.s32.totalorder %s3476_s1, %s3803_s0  ;;  %p3080_p7 = scmp.lt.s32.totalorder %s3078_s23, %s3073_s28 }
  0x7f   : > { %2753 = dma.hbm_to_vmem [thread:$0]  (!%p3868_p6), %s3874_s10, 2048, %s439_s15, [#allocation12], %s3871_s26, %s3871_s26, %s3870_s25  }
  0x80   : > { %p3076_p3 = pnand %p3074_p11, %p3422_p13  ;;  %p3081_p2 = por %p3080_p7, %p3079_p10 }
  0x82   : > { %p3077_p6 = pneg %p3076_p3 }
  0x84   : > { %p3082_p0 = pnand %p3081_p2, %p3077_p6 }
  0x86   : > { %3085 = shalt.err (!%p3082_p0)
}
  0x87   : > { %s3086_s3 = scalar_lea.vmem %s3478_s4, 512  ;;  %s3216_s24 = smov [#allocation2]  }
  0x88   : > { %p3087_p1 = scmp.ne.s32.totalorder %s3478_s4, %s3086_s3  ;;  %s3091_s10 = sshll.u32 %s3216_s24, 4  ;;  %s3092_s10 = int_to_ptr.vmem [resolvable:$false] %s3091_s10 }
  0x89   : > { %s3093_s15 = scalar_lea.vmem %s3092_s10, 1024  ;;  %p3094_p4 = scmp.lt.s32.totalorder %s3478_s4, %s3092_s10 }
  0x8a   : > { %p3089_p12 = pnand %p3087_p1, %p3422_p13  ;;  %p3095_p8 = scmp.lt.s32.totalorder %s3093_s15, %s3086_s3 }
  0x8c   : > { %p3090_p5 = pneg %p3089_p12  ;;  %p3096_p11 = por %p3095_p8, %p3094_p4 }
  0x8e   : > { %p3097_p3 = pnand %p3096_p11, %p3090_p5 }
  0x90   : > { %3100 = shalt.err (!%p3097_p3)
}
  0x91   : > { %2757 = dma.hbm_to_vmem [thread:$0]  (!%p3402_p9), %s3476_s1, 512, %s3478_s4, %s462_s14, %s3871_s26, %s3871_s26, %s3870_s25  }
  0x92   : > { %s2493_s28 = sshll.u32 %s3205_s16, 10  ;;  %s507_s3 = scalar_lea.vmem [#allocation7], %s2384_s11 }
  0x93   : > { %s3509_s8 = scalar_lea.hbm %s3805_s2, %s2493_s28  ;;  %s514_s24 = sshll.u32 %s507_s3, 4  ;;  %s515_s24 = int_to_ptr.vmem [resolvable:$true] %s514_s24 }
  0x94   : > { %s3101_s10 = scalar_lea.hbm %s3509_s8, 1024  ;;  %s3106_s25 = scalar_lea.hbm %s3805_s2, 2048 }
  0x95   : > { %p3102_p6 = scmp.ne.s32.totalorder %s3509_s8, %s3101_s10  ;;  %p3107_p2 = scmp.lt.s32.totalorder %s3509_s8, %s3805_s2 }
  0x96   : > { %p3108_p0 = scmp.lt.s32.totalorder %s3106_s25, %s3101_s10 }
  0x97   : > { %p3104_p10 = pnand %p3102_p6, %p3422_p13 }
  0x98   : > { %p3109_p1 = por %p3108_p0, %p3107_p2 }
  0x99   : > { %p3105_p7 = pneg %p3104_p10 }
  0x9b   : > { %p3110_p12 = pnand %p3109_p1, %p3105_p7 }
  0x9d   : > { %3113 = shalt.err (!%p3110_p12)
}
  0x9e   : > { %s3114_s11 = scalar_lea.vmem %s515_s24, 1024  ;;  %s3217_s20 = smov [#allocation7]  }
  0x9f   : > { %p3115_p5 = scmp.ne.s32.totalorder %s515_s24, %s3114_s11  ;;  %s3119_s14 = sshll.u32 %s3217_s20, 4  ;;  %s3120_s14 = int_to_ptr.vmem [resolvable:$false] %s3119_s14 }
  0xa0   : > { %s3121_s28 = scalar_lea.vmem %s3120_s14, 2048  ;;  %p3122_p11 = scmp.lt.s32.totalorder %s515_s24, %s3120_s14 }
  0xa1   : > { %p3117_p4 = pnand %p3115_p5, %p3422_p13  ;;  %p3123_p3 = scmp.lt.s32.totalorder %s3121_s28, %s3114_s11 }
  0xa3   : > { %p3118_p8 = pneg %p3117_p4  ;;  %p3124_p6 = por %p3123_p3, %p3122_p11 }
  0xa5   : > { %p3125_p10 = pnand %p3124_p6, %p3118_p8 }
  0xa7   : > { %3128 = shalt.err (!%p3125_p10)
}
  0xa8   : > { %2763 = dma.hbm_to_vmem [thread:$0]  (!%p3402_p9), %s3509_s8, 1024, %s515_s24, %s3416_s29, %s3867_s22, %s3867_s22, %s3866_s13  }
  0xa9   : > { %p3875_p13 = scmp.ne.s32.totalorder %s3855_s21, 0 }
  0xaa   : > { %s3536_s12 = sand.u32 (!%p3875_p13), 1, %s3197_s30   ;;  %p3876_p7 = scmp.ne.s32.totalorder (!%p3875_p13), %s3852_s19, 0 }
  0xab   : > { %526 = sbr.rel (%p3875_p13) target bundleno = 2519 (0x9d7), region = 76  ;;  %s2388_s23 = sshll.u32 (!%p3875_p13), %s3536_s12, 5 }
  0xac   : > { %s529_s18 = scalar_lea.sflag (!%p3875_p13), [#allocation3], %s3536_s12  ;;  %s3540_s3 = scalar_lea.vmem (!%p3875_p13), [#allocation2], %s2388_s23 }
  0xb0   : > { %3172 = dma.done.wait (%p3876_p7), %s529_s18, 512  }
  0xb1   : > { %3174 = vsyncadd (%p3876_p7), %s529_s18, 4294966784  ;;  %s537_s29 = sand.u32 1, %s3322_s17   ;;  %s2389_s21 = sshll.u32 %s3536_s12, 4 }
  0xb2   : > { %s538_s27 = scalar_lea.sflag [#allocation6], %s537_s29  ;;  %s3550_s13 = scalar_lea.vmem [#allocation5], %s2389_s21 }
  0xb3   : > { %3176 = dma.done.wait (%p3876_p7), %s538_s27, 1280  }
  0xb4   : > { %3178 = vsyncadd (%p3876_p7), %s538_s27, 4294966016  ;;  %s2390_s22 = sshll.u32 %s3536_s12, 6  ;;  %p3877_p9 = scmp.eq.s32.totalorder %s3322_s17, 0 }
  0xb5   : > { %s3557_s8 = scalar_lea.vmem [#allocation7], %s2390_s22 }
  0xb6   : > { %3180 = dma.done.wait (%p3877_p9), [#allocation9], 4096   ;;  %p3878_p2 = pmov %p3877_p9 }
  0xb8   : > { %3182 = vsyncadd (%p3878_p2), [#allocation9], 4294963200  ;;  %p3879_p0 = pmov %p3878_p2 }
  0xba   : > { %3184 = dma.done.wait (%p3879_p0), [#allocation12], 4096   ;;  %p3880_p1 = pmov %p3879_p0 }
  0xbb   : > { %v3218_v0 = vmov 0.0   ;;  %vm3219_vm0 = vmmov 0   ;;  %v2825_v1 = vld [vmem:[#allocation8 + $0x28] sm:$0xff]   ;;  %v2826_v2 = vld [vmem:[#allocation8 + $0x58] sm:$0xff]   ;;  %v2827_v3 = vld [vmem:[#allocation8 + $0x20] sm:$0xff]   ;;  %vm719_vm1 = vcmask 785408  }
  0xbc   : > { %3186 = vsyncadd (%p3880_p1), [#allocation12], 4294963200  ;;  %2573 = vmatprep.subr.bf16.mxu0 %v3218_v0  ;;  %2589 = vmatprep.subr.bf16.mxu1 %v3218_v0  ;;  %v2828_v4 = vld [vmem:[#allocation8 + $0x50] sm:$0xff]   ;;  %v2829_v5 = vld [vmem:[#allocation8 + $0x18] sm:$0xff]   ;;  %s3220_s19 = smov 96   ;;  %vm1034_vm2 = vcmask 261120  }
  0xbd   : > { %2585 = vmatprep.mubr.msk.bf16.mxu0 %vm3219_vm0, %v3218_v0  ;;  %2601 = vmatprep.mubr.msk.bf16.mxu1 %vm3219_vm0, %v3218_v0  ;;  %v2830_v6 = vld [vmem:[#allocation8 + $0x48] sm:$0xff]   ;;  %v2831_v7 = vld [vmem:[#allocation8 + $0x10] sm:$0xff]   ;;  %v2832_v8 = vld [vmem:[#allocation8 + $0x40] sm:$0xff]   ;;  %vm1232_vm3 = vcmask 130048   ;;  %s3221_s24 = smov 64   ;;  %s3881_s23 = sld [smem:[#allocation31_spill]] }
  0xbe   : > { %2574 = vmatpush3.bf16.msra.mxu0 %v2825_v1  ;;  %2590 = vmatpush3.bf16.msra.mxu1 %v2826_v2  ;;  %v2833_v9 = vld [vmem:[#allocation8 + $0x8] sm:$0xff]   ;;  %v2834_v10 = vld [vmem:[#allocation8 + $0x38] sm:$0xff]   ;;  %v2835_v11 = vld [vmem:[#allocation8] sm:$0xff]   ;;  %s3882_s29 = sld [smem:[#allocation32_spill]]  ;;  %s2204_s1 = scalar_lea.sflag [#allocation4], %s3536_s12 }
  0xbf   : > { %2575 = vmatprep.subr.bf16.mxu0 %v3218_v0  ;;  %2591 = vmatprep.subr.bf16.mxu1 %v3218_v0  ;;  %v2836_v12 = vld [vmem:[#allocation8 + $0x30] sm:$0xff]   ;;  %v2837_v13 = vld [vmem:[%s3540_s3] sm:$0xff]   ;;  %v2838_v14 = vld [vmem:[%s3540_s3 + $0x8] sm:$0xff]   ;;  %s3883_s22 = sld [smem:[#allocation33_spill]] }
  0xc0   : > { %v2839_v15 = vld [vmem:[#allocation8 + $0x88] sm:$0xff]   ;;  %v2840_v16 = vld [vmem:[#allocation8 + $0xb8] sm:$0xff]   ;;  %v2841_v17 = vld [vmem:[#allocation8 + $0x80] sm:$0xff]   ;;  %s3885_s25 = sld [smem:[#allocation34_spill]] }
  0xc1   : > { %v2842_v18 = vld [vmem:[#allocation8 + $0xb0] sm:$0xff]   ;;  %v2843_v19 = vld [vmem:[#allocation8 + $0x78] sm:$0xff]   ;;  %v2844_v20 = vld [vmem:[#allocation8 + $0xa8] sm:$0xff]  }
  0xc2   : > { %2576 = vmatpush3.bf16.msra.mxu0 %v2827_v3  ;;  %2592 = vmatpush3.bf16.msra.mxu1 %v2828_v4  ;;  %v2845_v21 = vld [vmem:[#allocation8 + $0x70] sm:$0xff]   ;;  %v2846_v22 = vld [vmem:[#allocation8 + $0xa0] sm:$0xff]   ;;  %v2847_v23 = vld [vmem:[#allocation8 + $0x68] sm:$0xff]  }
  0xc3   : > { %2577 = vmatprep.subr.bf16.mxu0 %v3218_v0  ;;  %2593 = vmatprep.subr.bf16.mxu1 %v3218_v0  ;;  %v2848_v24 = vld [vmem:[#allocation8 + $0x98] sm:$0xff]   ;;  %v2849_v25 = vld [vmem:[#allocation8 + $0x60] sm:$0xff]   ;;  %v2850_v26 = vld [vmem:[#allocation8 + $0x90] sm:$0xff]  }
  0xc4   : > { %v2851_v27 = vld [vmem:[%s3540_s3 + $0x10] sm:$0xff]   ;;  %v2852_v28 = vld [vmem:[%s3540_s3 + $0x18] sm:$0xff]   ;;  %v1023_v57 = vld [vmem:[%s3557_s8] sm:$0xff] }
  0xc5   : > { %v1025_v61 = vld [vmem:[%s3557_s8 + $0x10] sm:$0xff]  ;;  %v1024_v62 = vld [vmem:[%s3557_s8 + $0x8] sm:$0xff] }
  0xc6   : > { %2578 = vmatpush3.bf16.msra.mxu0 %v2829_v5  ;;  %2594 = vmatpush3.bf16.msra.mxu1 %v2830_v6 }
  0xc7   : > { %2579 = vmatprep.subr.bf16.mxu0 %v3218_v0  ;;  %2595 = vmatprep.subr.bf16.mxu1 %v3218_v0 }
  0xca   : > { %2580 = vmatpush3.bf16.msra.mxu0 %v2831_v7  ;;  %2596 = vmatpush3.bf16.msra.mxu1 %v2832_v8  ;;  %v1026_v7 = vld [vmem:[%s3557_s8 + $0x18] sm:$0xff] }
  0xcb   : > { %2581 = vmatprep.subr.bf16.mxu0 %v3218_v0  ;;  %2597 = vmatprep.subr.bf16.mxu1 %v3218_v0 }
  0xce   : > { %2582 = vmatpush3.bf16.msra.mxu0 %v2833_v9  ;;  %2598 = vmatpush3.bf16.msra.mxu1 %v2834_v10 }
  0xcf   : > { %2583 = vmatprep.subr.bf16.mxu0 %v3218_v0  ;;  %2599 = vmatprep.subr.bf16.mxu1 %v3218_v0 }
  0xd2   : > { %2584 = vmatpush3.bf16.msra.mxu0 %v2835_v11  ;;  %2600 = vmatpush3.bf16.msra.mxu1 %v2836_v12 }
  0xd3   : > { %2605 = vmatprep.subr.bf16.mxu0 %v3218_v0  ;;  %2621 = vmatprep.subr.bf16.mxu1 %v3218_v0 }
  0xd5   : > { %2586 = vmatmul.mubr.msk.bf16.vlgmr.msra.gmra.mxu0 %vm719_vm1, %v2837_v13  ;;  %2602 = vmatmul.mubr.msk.bf16.vlgmr.msra.gmra.mxu1 %vm719_vm1, %v2838_v14  ;;  %v1027_v14 = vld [vmem:[%s3557_s8 + $0x20] sm:$0xff] }
  0xd6   : > { %2606 = vmatpush3.bf16.msra.mxu0 %v2839_v15  ;;  %2622 = vmatpush3.bf16.msra.mxu1 %v2840_v16 }
  0xd7   : > { %2607 = vmatprep.subr.bf16.mxu0 %v3218_v0  ;;  %2623 = vmatprep.subr.bf16.mxu1 %v3218_v0 }
  0xd8   : > { %2617 = vmatprep.mubr.msk.bf16.mxu0 %vm3219_vm0, %v3218_v0  ;;  %2633 = vmatprep.mubr.msk.bf16.mxu1 %vm3219_vm0, %v3218_v0 }
  0xda   : > { %2608 = vmatpush3.bf16.msra.mxu0 %v2841_v17  ;;  %2624 = vmatpush3.bf16.msra.mxu1 %v2842_v18  ;;  %v1029_v18 = vld [vmem:[%s3557_s8 + $0x30] sm:$0xff] }
  0xdb   : > { %2609 = vmatprep.subr.bf16.mxu0 %v3218_v0  ;;  %2625 = vmatprep.subr.bf16.mxu1 %v3218_v0 }
  0xde   : > { %2610 = vmatpush3.bf16.msra.mxu0 %v2843_v19  ;;  %2626 = vmatpush3.bf16.msra.mxu1 %v2844_v20  ;;  %v1028_v19 = vld [vmem:[%s3557_s8 + $0x28] sm:$0xff] }
  0xdf   : > { %2611 = vmatprep.subr.bf16.mxu0 %v3218_v0  ;;  %2627 = vmatprep.subr.bf16.mxu1 %v3218_v0 }
  0xe2   : > { %2612 = vmatpush3.bf16.msra.mxu0 %v2845_v21  ;;  %2628 = vmatpush3.bf16.msra.mxu1 %v2846_v22 }
  0xe3   : > { %2613 = vmatprep.subr.bf16.mxu0 %v3218_v0  ;;  %2629 = vmatprep.subr.bf16.mxu1 %v3218_v0 }
  0xe6   : > { %2614 = vmatpush3.bf16.msra.mxu0 %v2847_v23  ;;  %2630 = vmatpush3.bf16.msra.mxu1 %v2848_v24 }
  0xe7   : > { %2615 = vmatprep.subr.bf16.mxu0 %v3218_v0  ;;  %2631 = vmatprep.subr.bf16.mxu1 %v3218_v0 }
  0xea   : > { %2616 = vmatpush3.bf16.msra.mxu0 %v2849_v25  ;;  %2632 = vmatpush3.bf16.msra.mxu1 %v2850_v26 }
  0xeb   : > { %2637 = vmatprep.subr.bf16.mxu0 %v3218_v0  ;;  %2643 = vmatprep.subr.bf16.mxu1 %v3218_v0 }
  0xed   : > { %2618 = vmatmul.mubr.msk.bf16.vlgmr.msra.gmra.mxu0 %vm719_vm1, %v2851_v27  ;;  %2634 = vmatmul.mubr.msk.bf16.vlgmr.msra.gmra.mxu1 %vm719_vm1, %v2852_v28  ;;  %v1030_v27 = vld [vmem:[%s3557_s8 + $0x38] sm:$0xff]  ;;  %s3884_s8 = sld [smem:[#allocation25_spill]] }
  0xee   : > { %2639 = vmatprep.mubr.msk.bf16.mxu0 %vm3219_vm0, %v3218_v0  ;;  %2645 = vmatprep.mubr.msk.bf16.mxu1 %vm3219_vm0, %v3218_v0 }
  0xf3   : > { %p3886_p5 = scmp.ne.s32.totalorder %s3884_s8, 0 }
 0x195   : > { %v757_v29 = vpop.f32.mrf.mxu0  ;;  %v842_v30 = vpop.f32.mrf.mxu1 }
 0x197   : > { %v2587_v31 = vpop.f32.mrf.mxu0  ;;  %v2603_v32 = vpop.f32.mrf.mxu1 }
 0x199   : > { %v760_v33 = vpop.f32.mrf.mxu0  ;;  %v845_v35 = vpop.f32.mrf.mxu1 }
 0x19a   : > { %v3613_v34 = vpack.c.bf16 %v760_v33, %v757_v29  ;;  %v3616_v38 = vpack.c.bf16 %v845_v35, %v842_v30 }
 0x19b   : > { %v2588_v36 = vpop.f32.mrf.mxu0  ;;  %v2604_v37 = vpop.f32.mrf.mxu1 }
 0x19c   : > { %1032 = vrot.lane.b32.xlu0 %v3613_v34, %s3220_s19 }
 0x1a0   : > { %1083 = vrot.lane.b32.xlu0 %v3616_v38, %s3220_s19 }
 0x1ad   : > { %v927_v39 = vpop.f32.mrf.mxu0  ;;  %v1012_v40 = vpop.f32.mrf.mxu1 }
 0x1af   : > { %v2619_v41 = vpop.f32.mrf.mxu0  ;;  %v2635_v42 = vpop.f32.mrf.mxu1 }
 0x1b1   : > { %v930_v43 = vpop.f32.mrf.mxu0  ;;  %v1015_v45 = vpop.f32.mrf.mxu1 }
 0x1b2   : > { %v3619_v44 = vpack.c.bf16 %v930_v43, %v927_v39  ;;  %v3622_v48 = vpack.c.bf16 %v1015_v45, %v1012_v40 }
 0x1b3   : > { %v2620_v46 = vpop.f32.mrf.mxu0  ;;  %v2636_v47 = vpop.f32.mrf.mxu1 }
 0x1b4   : > { %1133 = vrot.lane.b32.xlu1 %v3619_v44, %s3220_s19 }
 0x1b8   : > { %1183 = vrot.lane.b32.xlu1 %v3622_v48, %s3220_s19  ;;  %s2494_s19 = sshll.u32 %s3322_s17, 8  ;;  %s3223_s17 = smov [#allocation14]  }
 0x1b9   : > { %s3758_s26 = scalar_lea.hbm %s3885_s25, %s2494_s19 }
 0x20e   : > { %v1033_v49 = vpop.permute.xlu0 %1032 }
 0x20f   : > { %v1039_v50 = vsel %vm1034_vm2, %v1033_v49, 0 }
 0x210   : > { %2638 = vmatpush3.bf16.xpose.msra.mxu0 %v1039_v50 }
 0x211   : > { %2649 = vmatprep.subr.bf16.mxu0 %v3218_v0 }
 0x212   : > { %v1084_v51 = vpop.permute.xlu0 %1083 }
 0x213   : > { %v1089_v52 = vsel %vm1034_vm2, %v1084_v51, 0 }
 0x214   : > { %2644 = vmatpush3.bf16.xpose.msra.mxu1 %v1089_v52 }
 0x215   : > { %2655 = vmatprep.subr.bf16.mxu1 %v3218_v0 }
 0x217   : > { %2640 = vmatmul.mubr.msk.bf16.vlgmr.msra.gmra.mxu0 %vm1034_vm2, %v3613_v34 }
 0x218   : > { %2651 = vmatprep.mubr.msk.bf16.mxu0 %vm3219_vm0, %v3218_v0 }
 0x21b   : > { %2646 = vmatmul.mubr.msk.bf16.vlgmr.msra.gmra.mxu1 %vm1034_vm2, %v3616_v38 }
 0x21c   : > { %2657 = vmatprep.mubr.msk.bf16.mxu1 %vm3219_vm0, %v3218_v0 }
 0x226   : > { %v1134_v53 = vpop.permute.xlu1 %1133 }
 0x227   : > { %v1139_v54 = vsel %vm1034_vm2, %v1134_v53, 0 }
 0x228   : > { %2650 = vmatpush3.bf16.xpose.msra.mxu0 %v1139_v54 }
 0x229   : > { %2661 = vmatprep.subr.bf16.mxu0 %v3218_v0 }
 0x22a   : > { %v1184_v55 = vpop.permute.xlu1 %1183 }
 0x22b   : > { %v1189_v56 = vsel %vm1034_vm2, %v1184_v55, 0 }
 0x22c   : > { %2656 = vmatpush3.bf16.xpose.msra.mxu1 %v1189_v56 }
 0x22d   : > { %2667 = vmatprep.subr.bf16.mxu1 %v3218_v0 }
 0x22f   : > { %2652 = vmatmul.mubr.msk.bf16.vlgmr.msra.gmra.mxu0 %vm1034_vm2, %v3619_v44 }
 0x230   : > { %2663 = vmatprep.mubr.msk.bf16.mxu0 %vm3219_vm0, %v3218_v0 }
 0x233   : > { %2658 = vmatmul.mubr.msk.bf16.vlgmr.msra.gmra.mxu1 %vm1034_vm2, %v3622_v48 }
 0x234   : > { %2669 = vmatprep.mubr.msk.bf16.mxu1 %vm3219_vm0, %v3218_v0 }
 0x2d7   : > { %v1075_v58 = vpop.f32.mrf.mxu0 }
 0x2d8   : > { %v1076_v59 = vadd.f32 %v1075_v58, %v1023_v57 }
 0x2d9   : > { %v2641_v60 = vpop.f32.mrf.mxu0 }
 0x2da   : > { %v1233_v63 = vsel %vm1232_vm3, %v1076_v59, -inf }
 0x2db   : > { %v1125_v1 = vpop.f32.mrf.mxu1  ;;  %1234 = vmax.xlane.f32.xlu0 %v1233_v63  ;;  %v1078_v2 = vpop.f32.mrf.mxu0 }
 0x2dc   : > { %v1126_v3 = vadd.f32 %v1125_v1, %v1025_v61  ;;  %v1079_v4 = vadd.f32 %v1078_v2, %v1024_v62 }
 0x2dd   : > { %v2642_v5 = vpop.f32.mrf.mxu0  ;;  %v2647_v6 = vpop.f32.mrf.mxu1 }
 0x2de   : > { %v1239_v8 = vsel %vm1232_vm3, %v1126_v3, -inf  ;;  %v1236_v9 = vsel %vm1232_vm3, %v1079_v4, -inf }
 0x2df   : > { %v1128_v10 = vpop.f32.mrf.mxu1  ;;  %1240 = vmax.xlane.f32.xlu0 %v1239_v8  ;;  %1237 = vmax.xlane.f32.xlu1 %v1236_v9 }
 0x2e0   : > { %v1129_v11 = vadd.f32 %v1128_v10, %v1026_v7 }
 0x2e1   : > { %v2648_v12 = vpop.f32.mrf.mxu1 }
 0x2e2   : > { %v1242_v13 = vsel %vm1232_vm3, %v1129_v11, -inf }
 0x2e3   : > { %1243 = vmax.xlane.f32.xlu0 %v1242_v13 }
 0x2ef   : > { %v1175_v15 = vpop.f32.mrf.mxu0 }
 0x2f0   : > { %v1176_v16 = vadd.f32 %v1175_v15, %v1027_v14 }
 0x2f1   : > { %v2653_v17 = vpop.f32.mrf.mxu0 }
 0x2f2   : > { %v1245_v20 = vsel %vm1232_vm3, %v1176_v16, -inf }
 0x2f3   : > { %v1225_v21 = vpop.f32.mrf.mxu1  ;;  %1246 = vmax.xlane.f32.xlu1 %v1245_v20  ;;  %v1178_v22 = vpop.f32.mrf.mxu0 }
 0x2f4   : > { %v1226_v23 = vadd.f32 %v1225_v21, %v1029_v18  ;;  %v1179_v24 = vadd.f32 %v1178_v22, %v1028_v19 }
 0x2f5   : > { %v2654_v25 = vpop.f32.mrf.mxu0  ;;  %v2659_v26 = vpop.f32.mrf.mxu1 }
 0x2f6   : > { %v1251_v28 = vsel %vm1232_vm3, %v1226_v23, -inf  ;;  %v1248_v29 = vsel %vm1232_vm3, %v1179_v24, -inf }
 0x2f7   : > { %v1228_v30 = vpop.f32.mrf.mxu1  ;;  %1252 = vmax.xlane.f32.xlu1 %v1251_v28  ;;  %1249 = vmax.xlane.f32.xlu0 %v1248_v29 }
 0x2f8   : > { %v1229_v31 = vadd.f32 %v1228_v30, %v1030_v27 }
 0x2f9   : > { %v2660_v32 = vpop.f32.mrf.mxu1 }
 0x2fa   : > { %v1254_v33 = vsel %vm1232_vm3, %v1229_v31, -inf }
 0x2fb   : > { %1255 = vmax.xlane.f32.xlu0 %v1254_v33 }
 0x308   : > { %1325 = vrot.lane.b32.xlu1 %v3613_v34, %s3221_s24 }
 0x364   : > { %v1235_v35 = vpop.xlane.xlu0 %1234 }
 0x365   : > { %v1257_v36 = vsub.f32 %v1076_v59, %v1235_v35 }
 0x367   : > { %v1265_v37 = vmul.f32 1.442695, %v1257_v36 }
 0x368   : > { %v1241_v39 = vpop.xlane.xlu0 %1240  ;;  %v1238_v40 = vpop.xlane.xlu1 %1237 }
 0x369   : > { %2901 = vpow2.f32 %v1265_v37  ;;  %v1259_v41 = vsub.f32 %v1126_v3, %v1241_v39  ;;  %v1258_v42 = vsub.f32 %v1079_v4, %v1238_v40 }
 0x36b   : > { %v1269_v43 = vmul.f32 1.442695, %v1259_v41  ;;  %v1267_v45 = vmul.f32 1.442695, %v1258_v42 }
 0x36c   : > { %v1244_v46 = vpop.xlane.xlu0 %1243 }
 0x36d   : > { %2903 = vpow2.f32 %v1269_v43  ;;  %v1260_v47 = vsub.f32 %v1129_v11, %v1244_v46  ;;  %v2853_v46 = vld [vmem:[#allocation10 + $0x8] sm:$0xff]  }
 0x36e   : > { %2905 = vpow2.f32 %v1267_v45 }
 0x36f   : > { %v1271_v49 = vmul.f32 1.442695, %v1260_v47  ;;  %v2854_v47 = vld [vmem:[#allocation10] sm:$0xff]  }
 0x371   : > { %2907 = vpow2.f32 %v1271_v49  ;;  %v2855_v49 = vld [vmem:[#allocation10 + $0x18] sm:$0xff]  }
 0x376   : > { %v2902_v50 = vpop.eup %2901 }
 0x377   : > { %v1281_v51 = vsel %vm1232_vm3, %v2902_v50, 0.0 }
 0x378   : > { %1282 = vadd.xlane.f32.xlu1 %v1281_v51 }
 0x37a   : > { %v3668_v34 = vpop.eup %2903 }
 0x37b   : > { %v2906_v52 = vpop.eup %2905  ;;  %v1287_v53 = vsel %vm1232_vm3, %v3668_v34, 0.0 }
 0x37c   : > { %1288 = vadd.xlane.f32.xlu1 %v1287_v53  ;;  %v1247_v54 = vpop.xlane.xlu1 %1246  ;;  %v1284_v55 = vsel %vm1232_vm3, %v2906_v52, 0.0  ;;  %v2857_v53 = vld [vmem:[#allocation10 + $0x28] sm:$0xff]  }
 0x37d   : > { %v1261_v56 = vsub.f32 %v1176_v16, %v1247_v54  ;;  %1285 = vadd.xlane.f32.xlu0 %v1284_v55 }
 0x37e   : > { %v3673_v57 = vpop.eup %2907 }
 0x37f   : > { %v1273_v58 = vmul.f32 1.442695, %v1261_v56  ;;  %v1290_v59 = vsel %vm1232_vm3, %v3673_v57, 0.0  ;;  %v2858_v56 = vld [vmem:[#allocation10 + $0x20] sm:$0xff]  }
 0x380   : > { %v1253_v60 = vpop.xlane.xlu1 %1252  ;;  %v1250_v61 = vpop.xlane.xlu0 %1249 }
 0x381   : > { %2909 = vpow2.f32 %v1273_v58  ;;  %v1263_v62 = vsub.f32 %v1226_v23, %v1253_v60  ;;  %1291 = vadd.xlane.f32.xlu0 %v1290_v59  ;;  %v1262_v63 = vsub.f32 %v1179_v24, %v1250_v61  ;;  %v2859_v60 = vld [vmem:[#allocation10 + $0x38] sm:$0xff]  }
 0x383   : > { %v1277_v1 = vmul.f32 1.442695, %v1263_v62  ;;  %v1275_v2 = vmul.f32 1.442695, %v1262_v63 }
 0x384   : > { %v1326_v3 = vpop.permute.xlu1 %1325  ;;  %v1256_v4 = vpop.xlane.xlu0 %1255 }
 0x385   : > { %2911 = vpow2.f32 %v1277_v1  ;;  %v1264_v5 = vsub.f32 %v1229_v31, %v1256_v4  ;;  %2662 = vmatpush3.bf16.msra.mxu0 %v1326_v3  ;;  %v2860_v1 = vld [vmem:[#allocation10 + $0x30] sm:$0xff]  }
 0x386   : > { %2913 = vpow2.f32 %v1275_v2  ;;  %2673 = vmatprep.subr.bf16.mxu0 %v3218_v0 }
 0x387   : > { %v1279_v6 = vmul.f32 1.442695, %v1264_v5 }
 0x389   : > { %2915 = vpow2.f32 %v1279_v6 }
 0x38e   : > { %v2910_v7 = vpop.eup %2909 }
 0x38f   : > { %v1293_v8 = vsel %vm1232_vm3, %v2910_v7, 0.0 }
 0x390   : > { %1294 = vadd.xlane.f32.xlu1 %v1293_v8 }
 0x392   : > { %v2912_v9 = vpop.eup %2911 }
 0x393   : > { %v2914_v10 = vpop.eup %2913  ;;  %v1299_v11 = vsel %vm1232_vm3, %v2912_v9, 0.0 }
 0x394   : > { %1300 = vadd.xlane.f32.xlu1 %v1299_v11  ;;  %v1296_v12 = vsel %vm1232_vm3, %v2914_v10, 0.0 }
 0x395   : > { %1297 = vadd.xlane.f32.xlu0 %v1296_v12 }
 0x396   : > { %v2916_v13 = vpop.eup %2915 }
 0x397   : > { %v1302_v14 = vsel %vm1232_vm3, %v2916_v13, 0.0 }
 0x399   : > { %1303 = vadd.xlane.f32.xlu0 %v1302_v14 }
 0x3a5   : > { %1419 = vrot.lane.b32.xlu1 %v3619_v44, %s3221_s24 }
 0x3a9   : > { %1466 = vrot.lane.b32.xlu1 %v3622_v48, %s3221_s24 }
 0x3af   : > { %1372 = vrot.lane.b32.xlu0 %v3616_v38, %s3221_s24  ;;  %s620_s24 = scalar_lea.vmem [#allocation14], %s2389_s21  ;;  %s3133_s21 = sshll.u32 %s3223_s17, 4  ;;  %s3134_s21 = int_to_ptr.vmem [resolvable:$false] %s3133_s21 }
 0x3b0   : > { %s2217_s10 = sshll.u32 %s620_s24, 4  ;;  %s3135_s20 = scalar_lea.vmem %s3134_s21, 512  ;;  %s3760_s10 = int_to_ptr.vmem [resolvable:$true] %s2217_s10 }
 0x3b1   : > { %s3129_s11 = scalar_lea.vmem %s3760_s10, 256  ;;  %p3136_p11 = scmp.lt.s32.totalorder %s3760_s10, %s3134_s21 }
 0x3b2   : > { %p3130_p12 = scmp.ne.s32.totalorder %s3760_s10, %s3129_s11  ;;  %p3137_p3 = scmp.lt.s32.totalorder %s3135_s20, %s3129_s11 }
 0x3b4   : > { %p3131_p4 = pnand %p3130_p12, %p3886_p5  ;;  %p3138_p6 = por %p3137_p3, %p3136_p11 }
 0x3b6   : > { %p3132_p8 = pneg %p3131_p4 }
 0x3b8   : > { %p3139_p10 = pnand %p3138_p6, %p3132_p8 }
 0x401   : > { %v1283_v15 = vpop.xlane.xlu1 %1282 }
 0x402   : > { %2917 = vrcp.f32 %v1283_v15 }
 0x405   : > { %v1289_v19 = vpop.xlane.xlu1 %1288 }
 0x406   : > { %v1286_v16 = vpop.xlane.xlu0 %1285 }
 0x407   : > { %2919 = vrcp.f32 %v1286_v16 }
 0x40a   : > { %v1292_v17 = vpop.xlane.xlu0 %1291 }
 0x40b   : > { %2921 = vrcp.f32 %v1292_v17 }
 0x40c   : > { %2923 = vrcp.f32 %v1289_v19 }
 0x40f   : > { %v2918_v18 = vpop.eup %2917 }
 0x410   : > { %v1313_v21 = vmul.f32 %v2918_v18, %v2902_v50  ;;  %v2856_v50 = vld [vmem:[#allocation10 + $0x10] sm:$0xff]  }
 0x414   : > { %v2920_v20 = vpop.eup %2919 }
 0x415   : > { %v1314_v22 = vmul.f32 %v2920_v20, %v2906_v52 }
 0x417   : > { %v1321_v23 = vpack.c.bf16 %v1314_v22, %v1313_v21 }
 0x418   : > { %v2922_v24 = vpop.eup %2921 }
 0x419   : > { %2664 = vmatmul.mubr.msk.bf16.vlgmr.msra.gmra.mxu0 %vm1232_vm3, %v1321_v23  ;;  %v1295_v44 = vpop.xlane.xlu1 %1294  ;;  %v2924_v27 = vpop.eup %2923  ;;  %v1316_v28 = vmul.f32 %v2922_v24, %v3673_v57 }
 0x41a   : > { %2675 = vmatprep.mubr.msk.bf16.mxu0 %vm3219_vm0, %v3218_v0  ;;  %2925 = vrcp.f32 %v1295_v44  ;;  %v1315_v30 = vmul.f32 %v2924_v27, %v3668_v34  ;;  %v2448_v44 = vld [vmem:[%s3808_s5] ss:$0 sm:$0xff] }
 0x41c   : > { %v1322_v31 = vpack.c.bf16 %v1316_v28, %v1315_v30 }
 0x41d   : > { %v1301_v38 = vpop.xlane.xlu1 %1300 }
 0x41e   : > { %v1298_v48 = vpop.xlane.xlu0 %1297 }
 0x41f   : > { %2927 = vrcp.f32 %v1298_v48 }
 0x420   : > { %2929 = vrcp.f32 %v1301_v38 }
 0x421   : > { %v1420_v25 = vpop.permute.xlu1 %1419 }
 0x422   : > { %v1304_v26 = vpop.xlane.xlu0 %1303  ;;  %2674 = vmatpush3.bf16.msra.mxu0 %v1420_v25 }
 0x423   : > { %2931 = vrcp.f32 %v1304_v26  ;;  %2685 = vmatprep.subr.bf16.mxu0 %v3218_v0  ;;  %v1772_v26 = vld [vmem:[%s3550_s13] sm:$0xff] }
 0x425   : > { %v1467_v33 = vpop.permute.xlu1 %1466 }
 0x426   : > { %v1373_v29 = vpop.permute.xlu0 %1372 }
 0x427   : > { %2668 = vmatpush3.bf16.msra.mxu1 %v1373_v29  ;;  %v2926_v32 = vpop.eup %2925 }
 0x428   : > { %2679 = vmatprep.subr.bf16.mxu1 %v3218_v0  ;;  %v1317_v36 = vmul.f32 %v2926_v32, %v2910_v7 }
 0x42a   : > { %2670 = vmatmul.mubr.msk.bf16.vlgmr.msra.gmra.mxu1 %vm1232_vm3, %v1322_v31 }
 0x42b   : > { %2680 = vmatpush3.bf16.msra.mxu1 %v1467_v33  ;;  %2681 = vmatprep.mubr.msk.bf16.mxu1 %vm3219_vm0, %v3218_v0  ;;  %v1773_v33 = vld [vmem:[%s3550_s13 + $0x8] sm:$0xff] }
 0x42c   : > { %v2928_v35 = vpop.eup %2927  ;;  %2693 = vmatprep.subr.bf16.mxu1 %v3218_v0 }
 0x42d   : > { %v1318_v37 = vmul.f32 %v2928_v35, %v2914_v10  ;;  %v2930_v39 = vpop.eup %2929 }
 0x42e   : > { %v1319_v42 = vmul.f32 %v2930_v39, %v2912_v9  ;;  %v2863_v39 = vld [vmem:[#allocation11 + $0x74] ss:$8 sps:$4 sm:$0xff]  }
 0x42f   : > { %v1323_v40 = vpack.c.bf16 %v1318_v37, %v1317_v36  ;;  %v2861_v37 = vld [vmem:[#allocation11 + $0x70] ss:$8 sps:$4 sm:$0xff]  }
 0x430   : > { %v2932_v41 = vpop.eup %2931 }
 0x431   : > { %2676 = vmatmul.mubr.msk.bf16.vlgmr.msra.gmra.mxu0 %vm1232_vm3, %v1323_v40  ;;  %v1320_v43 = vmul.f32 %v2932_v41, %v2916_v13 }
 0x432   : > { %2689 = vmatprep.mubr.msk.bf16.mxu0 %vm3219_vm0, %v3218_v0  ;;  %2686 = vmatpush3.bf16.msra.mxu0 %v2853_v46 }
 0x433   : > { %v1324_v45 = vpack.c.bf16 %v1320_v43, %v1319_v42  ;;  %2687 = vmatprep.subr.bf16.mxu0 %v3218_v0 }
 0x435   : > { %2682 = vmatmul.mubr.msk.bf16.vlgmr.msra.gmra.mxu1 %vm1232_vm3, %v1324_v45 }
 0x436   : > { %2697 = vmatprep.mubr.msk.bf16.mxu1 %vm3219_vm0, %v3218_v0  ;;  %2688 = vmatpush3.bf16.msra.mxu0 %v2854_v47 }
 0x437   : > { %2701 = vmatprep.subr.bf16.mxu0 %v3218_v0  ;;  %2694 = vmatpush3.bf16.msra.mxu1 %v2855_v49 }
 0x438   : > { %2695 = vmatprep.subr.bf16.mxu1 %v3218_v0 }
 0x43b   : > { %2696 = vmatpush3.bf16.msra.mxu1 %v2856_v50  ;;  %v2866_v50 = vld [vmem:[#allocation11 + $0x64] ss:$8 sps:$4 sm:$0xff]  }
 0x43c   : > { %2709 = vmatprep.subr.bf16.mxu1 %v3218_v0 }
 0x4d9   : > { %v1365_v51 = vpop.f32.mrf.mxu0 }
 0x4db   : > { %v2665_v34 = vpop.f32.mrf.mxu0 }
 0x4dc   : > { %v2869_v34 = vld [vmem:[#allocation11 + $0x54] ss:$8 sps:$4 sm:$0xff]  }
 0x4dd   : > { %v1368_v52 = vpop.f32.mrf.mxu0 }
 0x4de   : > { %v1513_v54 = vpack.c.bf16 %v1368_v52, %v1365_v51  ;;  %v2864_v51 = vld [vmem:[#allocation11 + $0x60] ss:$8 sps:$4 sm:$0xff]   ;;  %v2867_v52 = vld [vmem:[#allocation11 + $0x50] ss:$8 sps:$4 sm:$0xff]  }
 0x4df   : > { %v2666_v55 = vpop.f32.mrf.mxu0 }
 0x4e0   : > { %2690 = vmatmul.mubr.msk.bf16.vlgmr.msra.gmra.mxu0 %vm1034_vm2, %v1513_v54  ;;  %v2872_v54 = vld [vmem:[#allocation11 + $0x44] ss:$8 sps:$4 sm:$0xff]   ;;  %v2875_v55 = vld [vmem:[#allocation11 + $0x34] ss:$8 sps:$4 sm:$0xff]  }
 0x4e1   : > { %2702 = vmatpush3.bf16.msra.mxu0 %v2857_v53  ;;  %2705 = vmatprep.mubr.msk.bf16.mxu0 %vm3219_vm0, %v3218_v0  ;;  %v2870_v53 = vld [vmem:[#allocation11 + $0x40] ss:$8 sps:$4 sm:$0xff]  }
 0x4e2   : > { %2703 = vmatprep.subr.bf16.mxu0 %v3218_v0 }
 0x4e5   : > { %2704 = vmatpush3.bf16.msra.mxu0 %v2858_v56  ;;  %v2873_v56 = vld [vmem:[#allocation11 + $0x30] ss:$8 sps:$4 sm:$0xff]  }
 0x4e6   : > { %1926 = vmatprep.subr.bf16.mxu0 %v2863_v39 }
 0x4ea   : > { %v1412_v57 = vpop.f32.mrf.mxu1 }
 0x4ec   : > { %v2671_v58 = vpop.f32.mrf.mxu1 }
 0x4ed   : > { %v3222_v58 = vmov 0  }
 0x4ee   : > { %v1415_v59 = vpop.f32.mrf.mxu1 }
 0x4ef   : > { %v1514_v61 = vpack.c.bf16 %v1415_v59, %v1412_v57  ;;  %v2878_v57 = vld [vmem:[#allocation11 + $0x24] ss:$8 sps:$4 sm:$0xff]   ;;  %v2876_v59 = vld [vmem:[#allocation11 + $0x20] ss:$8 sps:$4 sm:$0xff]  }
 0x4f0   : > { %v2672_v62 = vpop.f32.mrf.mxu1 }
 0x4f1   : > { %v1459_v63 = vpop.f32.mrf.mxu0  ;;  %2698 = vmatmul.mubr.msk.bf16.vlgmr.msra.gmra.mxu1 %vm1034_vm2, %v1514_v61  ;;  %v2879_v61 = vld [vmem:[#allocation11 + $0x10] ss:$8 sps:$4 sm:$0xff]   ;;  %v2884_v62 = vld [vmem:[#allocation11 + $0x4] ss:$8 sps:$4 sm:$0xff]  }
 0x4f2   : > { %2710 = vmatpush3.bf16.msra.mxu1 %v2859_v60  ;;  %2713 = vmatprep.mubr.msk.bf16.mxu1 %vm3219_vm0, %v3218_v0  ;;  %v2881_v60 = vld [vmem:[#allocation11 + $0x14] ss:$8 sps:$4 sm:$0xff]  }
 0x4f3   : > { %v2677_v2 = vpop.f32.mrf.mxu0  ;;  %2711 = vmatprep.subr.bf16.mxu1 %v3218_v0 }
 0x4f4   : > { %v2886_v2 = vld [vmem:[#allocation13 + $0x38] sm:$0xff]  }
 0x4f5   : > { %v1462_v3 = vpop.f32.mrf.mxu0  ;;  %v1506_v4 = vpop.f32.mrf.mxu1 }
 0x4f6   : > { %v1515_v5 = vpack.c.bf16 %v1462_v3, %v1459_v63  ;;  %2712 = vmatpush3.bf16.msra.mxu1 %v2860_v1  ;;  %v2882_v63 = vld [vmem:[#allocation11] ss:$8 sps:$4 sm:$0xff]   ;;  %v2885_v1 = vld [vmem:[#allocation13 + $0x78] sm:$0xff]   ;;  %v2887_v3 = vld [vmem:[#allocation13 + $0x70] sm:$0xff]  }
 0x4f7   : > { %v2678_v6 = vpop.f32.mrf.mxu0  ;;  %v2683_v7 = vpop.f32.mrf.mxu1  ;;  %2551 = vmatprep.subr.bf16.mxu1 %v2885_v1 }
 0x4f8   : > { %2706 = vmatmul.mubr.msk.bf16.vlgmr.msra.gmra.mxu0 %vm1034_vm2, %v1515_v5  ;;  %v2889_v5 = vld [vmem:[#allocation13 + $0x68] sm:$0xff]   ;;  %v2891_v7 = vld [vmem:[#allocation13 + $0x60] sm:$0xff]  }
 0x4f9   : > { %v1509_v8 = vpop.f32.mrf.mxu1  ;;  %1927 = vmatpush1.bf16.msra.mxu0 %v2861_v37  ;;  %1958 = vmatprep.mubr.bf16.mxu0 %v3222_v58  ;;  %v2890_v6 = vld [vmem:[#allocation13 + $0x28] sm:$0xff]  }
 0x4fa   : > { %v1516_v9 = vpack.c.bf16 %v1509_v8, %v1506_v4  ;;  %1928 = vmatprep.subr.bf16.mxu0 %v2866_v50  ;;  %v2888_v4 = vld [vmem:[#allocation13 + $0x30] sm:$0xff]   ;;  %v2892_v8 = vld [vmem:[#allocation13 + $0x20] sm:$0xff]  }
 0x4fb   : > { %v2684_v10 = vpop.f32.mrf.mxu1 }
 0x4fc   : > { %2714 = vmatmul.mubr.msk.bf16.vlgmr.msra.gmra.mxu1 %vm1034_vm2, %v1516_v9  ;;  %v2893_v9 = vld [vmem:[#allocation13 + $0x58] sm:$0xff]  }
 0x4fd   : > { %1929 = vmatpush1.bf16.msra.mxu0 %v2864_v51  ;;  %2552 = vmatpush3.bf16.msra.mxu1 %v2886_v2 }
 0x4fe   : > { %1930 = vmatprep.subr.bf16.mxu0 %v2869_v34  ;;  %2553 = vmatprep.subr.bf16.mxu1 %v2887_v3 }
 0x501   : > { %1931 = vmatpush1.bf16.msra.mxu0 %v2867_v52  ;;  %2554 = vmatpush3.bf16.msra.mxu1 %v2888_v4 }
 0x502   : > { %1932 = vmatprep.subr.bf16.mxu0 %v2872_v54  ;;  %2555 = vmatprep.subr.bf16.mxu1 %v2889_v5 }
 0x505   : > { %1933 = vmatpush1.bf16.msra.mxu0 %v2870_v53  ;;  %2556 = vmatpush3.bf16.msra.mxu1 %v2890_v6 }
 0x506   : > { %1934 = vmatprep.subr.bf16.mxu0 %v2875_v55  ;;  %2557 = vmatprep.subr.bf16.mxu1 %v2891_v7 }
 0x509   : > { %1935 = vmatpush1.bf16.msra.mxu0 %v2873_v56  ;;  %2558 = vmatpush3.bf16.msra.mxu1 %v2892_v8 }
 0x50a   : > { %1936 = vmatprep.subr.bf16.mxu0 %v2878_v57  ;;  %2559 = vmatprep.subr.bf16.mxu1 %v2893_v9 }
 0x50d   : > { %1937 = vmatpush1.bf16.msra.mxu0 %v2876_v59  ;;  %v2467_v59 = vld [vmem:[%s3881_s23] ss:$0 sm:$0xff] }
 0x50e   : > { %1938 = vmatprep.subr.bf16.mxu0 %v2881_v60 }
 0x511   : > { %1939 = vmatpush1.bf16.msra.mxu0 %v2879_v61 }
 0x512   : > { %1940 = vmatprep.subr.bf16.mxu0 %v2884_v62 }
 0x515   : > { %1941 = vmatpush1.bf16.msra.mxu0 %v2882_v63 }
 0x5a0   : > { %v1582_v11 = vpop.f32.mrf.mxu0 }
 0x5a2   : > { %v2691_v12 = vpop.f32.mrf.mxu0 }
 0x5a4   : > { %v1585_v13 = vpop.f32.mrf.mxu0 }
 0x5a6   : > { %v2692_v14 = vpop.f32.mrf.mxu0 }
 0x5b1   : > { %v1638_v15 = vpop.f32.mrf.mxu1 }
 0x5b2   : > { %v1757_v19 = vadd.f32 %v1638_v15, %v1582_v11 }
 0x5b3   : > { %v2699_v0 = vpop.f32.mrf.mxu1 }
 0x5b5   : > { %v1641_v16 = vpop.f32.mrf.mxu1 }
 0x5b6   : > { %v1760_v38 = vadd.f32 %v1641_v16, %v1585_v13 }
 0x5b7   : > { %v2700_v17 = vpop.f32.mrf.mxu1 }
 0x5b8   : > { %v1694_v18 = vpop.f32.mrf.mxu0  ;;  %v2449_v17 = vld [vmem:[%s3809_s6] ss:$0 sm:$0xff] }
 0x5b9   : > { %v1758_v21 = vadd.f32 %v1757_v19, %v1694_v18 }
 0x5ba   : > { %v2707_v20 = vpop.f32.mrf.mxu0 }
 0x5bc   : > { %v1697_v22 = vpop.f32.mrf.mxu0  ;;  %v1750_v23 = vpop.f32.mrf.mxu1 }
 0x5bd   : > { %v1759_v48 = vadd.f32 %v1758_v21, %v1750_v23  ;;  %v1761_v27 = vadd.f32 %v1760_v38, %v1697_v22  ;;  %v2450_v21 = vld [vmem:[%s3810_s7] ss:$0 sm:$0xff] }
 0x5be   : > { %v2708_v24 = vpop.f32.mrf.mxu0  ;;  %v2715_v25 = vpop.f32.mrf.mxu1 }
 0x5bf   : > { %v1770_v28 = vadd.f32 %v2448_v44, %v1759_v48  ;;  %v2894_v48 = vld [vmem:[#allocation13 + $0x18] sm:$0xff]   ;;  %v2895_v24 = vld [vmem:[#allocation13 + $0x50] sm:$0xff]  }
 0x5c0   : > { %v1753_v29 = vpop.f32.mrf.mxu1  ;;  %2560 = vmatpush3.bf16.msra.mxu1 %v2894_v48  ;;  %v2896_v25 = vld [vmem:[#allocation13 + $0x10] sm:$0xff]  }
 0x5c1   : > { %v1762_v30 = vadd.f32 %v1761_v27, %v1753_v29  ;;  %v1774_v31 = vadd.f32 %v1772_v26, %v1770_v28  ;;  %2561 = vmatprep.subr.bf16.mxu1 %v2895_v24  ;;  %v2897_v26 = vld [vmem:[#allocation13 + $0x48] sm:$0xff]   ;;  %v2899_v28 = vld [vmem:[#allocation13 + $0x40] sm:$0xff]  }
 0x5c2   : > { %v2716_v32 = vpop.f32.mrf.mxu1  ;;  %v2898_v27 = vld [vmem:[#allocation13 + $0x8] sm:$0xff]   ;;  %v2900_v29 = vld [vmem:[#allocation13] sm:$0xff]  }
 0x5c3   : > { %v1771_v35 = vadd.f32 %v2448_v44, %v1762_v30  ;;  %1776 = vadd.xlane.f32.xlu0 %v1774_v31  ;;  %v1836_v30 = vlaneseq }
 0x5c4   : > { %2562 = vmatpush3.bf16.msra.mxu1 %v2896_v25 }
 0x5c5   : > { %v1775_v36 = vadd.f32 %v1773_v33, %v1771_v35  ;;  %2563 = vmatprep.subr.bf16.mxu1 %v2897_v26  ;;  %v1834_v35 = vld [vmem:[%s3812_s9] sm:$0x3] }
 0x5c7   : > { %1778 = vadd.xlane.f32.xlu1 %v1775_v36 }
 0x5c8   : > { %2564 = vmatpush3.bf16.msra.mxu1 %v2898_v27 }
 0x5c9   : > { %2565 = vmatprep.subr.bf16.mxu1 %v2899_v28 }
 0x5cc   : > { %2566 = vmatpush3.bf16.msra.mxu1 %v2900_v29 }
 0x64c   : > { %v1777_v40 = vpop.xlane.xlu0 %1776 }
 0x64d   : > { %v1781_v41 = vmul.f32 0.0078125, %v1777_v40 }
 0x64f   : > { %v3724_v42 = vsub.f32 %v1774_v31, %v1781_v41  ;;  %v1837_v31 = vshrl.u32 %v1836_v30, 7 }
 0x650   : > { %v1779_v43 = vpop.xlane.xlu1 %1778 }
 0x651   : > { %v1782_v45 = vmul.f32 0.0078125, %v1779_v43  ;;  %v1785_v46 = vmul.f32 %v3724_v42, %v3724_v42  ;;  %v1842_v32 = vsub.s32 1, %v1837_v31  ;;  %v1838_v33 = vsub.s32 0, %v1837_v31 }
 0x653   : > { %v3728_v47 = vsub.f32 %v1775_v36, %v1782_v45  ;;  %1787 = vadd.xlane.f32.xlu0 %v1785_v46  ;;  %v1843_v36 = vrot.slane %v1834_v35, %v1842_v32  ;;  %v1839_v37 = vrot.slane %v1834_v35, %v1838_v33 }
 0x655   : > { %v1786_v49 = vmul.f32 %v3728_v47, %v3728_v47 }
 0x657   : > { %1789 = vadd.xlane.f32.xlu0 %v1786_v49 }
 0x6dc   : > { %v1788_v10 = vpop.xlane.xlu0 %1787 }
 0x6dd   : > { %v1791_v11 = vmul.f32 0.0078125, %v1788_v10 }
 0x6df   : > { %v1793_v12 = vadd.f32 1e-05, %v1791_v11 }
 0x6e0   : > { %v1790_v13 = vpop.xlane.xlu0 %1789 }
 0x6e1   : > { %2933 = vrsqrt.f32 %v1793_v12  ;;  %v1792_v14 = vmul.f32 0.0078125, %v1790_v13 }
 0x6e3   : > { %v1794_v15 = vadd.f32 1e-05, %v1792_v14 }
 0x6e5   : > { %2935 = vrsqrt.f32 %v1794_v15 }
 0x6ee   : > { %v2934_v0 = vpop.eup %2933 }
 0x6ef   : > { %v1797_v16 = vmul.f32 %v2934_v0, %v3724_v42 }
 0x6f1   : > { %v1806_v20 = vmul.f32 %v2449_v17, %v1797_v16 }
 0x6f2   : > { %v2936_v18 = vpop.eup %2935 }
 0x6f3   : > { %v1798_v19 = vmul.f32 %v2936_v18, %v3728_v47  ;;  %v1815_v23 = vadd.f32 %v2450_v21, %v1806_v20  ;;  %v2484_v20 = vld [vmem:[%s3882_s29] ss:$0 sm:$0xff] }
 0x6f5   : > { %v1807_v22 = vmul.f32 %v2449_v17, %v1798_v19 }
 0x6f7   : > { %v1816_v44 = vadd.f32 %v2450_v21, %v1807_v22  ;;  %v2485_v22 = vld [vmem:[%s3883_s22] ss:$0 sm:$0xff] }
 0x6f9   : > { %v1817_v38 = vpack.c.bf16 %v1816_v44, %v1815_v23 }
 0x6fb   : > { %1959 = vmatmul.mubr.bf16.vlgmr.msra.gmra.mxu0 %v1817_v38 }
 0x7bb   : > { %v1960_v39 = vpop.f32.mrf.mxu0 }
 0x7bc   : > { %v1961_v42 = vadd.f32 %v1960_v39, %v1839_v37 }
 0x7bd   : > { %v1962_v40 = vpop.f32.mrf.mxu0 }
 0x7be   : > { %v1963_v41 = vadd.f32 %v1962_v40, %v1843_v36  ;;  %v1973_v51 = vmul.f32 0.05, %v1961_v42  ;;  %vm1969_vm6 = vcmp.ge.f32.partialorder %v1961_v42, 0.0 }
 0x7bf   : > { %v1964_v43 = vpop.f32.mrf.mxu0 }
 0x7c0   : > { %v1965_v45 = vadd.f32 %v1964_v43, %v1839_v37  ;;  %v1974_v47 = vmul.f32 0.05, %v1963_v41  ;;  %vm1970_vm5 = vcmp.ge.f32.partialorder %v1963_v41, 0.0  ;;  %v1977_v55 = vsel %vm1969_vm6, %v1961_v42, %v1973_v51 }
 0x7c1   : > { %v1966_v46 = vpop.f32.mrf.mxu0 }
 0x7c2   : > { %vm1971_vm4 = vcmp.ge.f32.partialorder %v1965_v45, 0.0  ;;  %v1975_v49 = vmul.f32 0.05, %v1965_v45  ;;  %v1967_v50 = vadd.f32 %v1966_v46, %v1843_v36  ;;  %v1978_v53 = vsel %vm1970_vm5, %v1963_v41, %v1974_v47 }
 0x7c4   : > { %vm1972_vm7 = vcmp.ge.f32.partialorder %v1967_v50, 0.0  ;;  %v1976_v34 = vmul.f32 0.05, %v1967_v50  ;;  %v1979_v52 = vsel %vm1971_vm4, %v1965_v45, %v1975_v49 }
 0x7c5   : > { %v1981_v57 = vpack.c.bf16 %v1979_v52, %v1977_v55 }
 0x7c6   : > { %v1980_v54 = vsel %vm1972_vm7, %v1967_v50, %v1976_v34 }
 0x7c7   : > { %v1982_v56 = vpack.c.bf16 %v1980_v54, %v1978_v53 }
 0x7c9   : > { %2150 = vmatprep.mubr.bf16.mxu1 %v1982_v56 }
 0x7ca   : > { %2151 = vmatmul.mubr.bf16.vlgmr.msra.gmra.mxu1 %v1981_v57 }
 0x88a   : > { %v2567_v58 = vpop.f32.mrf.mxu1 }
 0x88c   : > { %v2568_v60 = vpop.f32.mrf.mxu1 }
 0x88d   : > { %v2569_v61 = vadd.f32 %v2568_v60, %v2567_v58 }
 0x88e   : > { %v2570_v62 = vpop.f32.mrf.mxu1 }
 0x88f   : > { %v2153_v63 = vadd.f32 %v2569_v61, %v2467_v59 }
 0x890   : > { %v2571_v1 = vpop.f32.mrf.mxu1 }
 0x891   : > { %v2572_v2 = vadd.f32 %v2571_v1, %v2570_v62  ;;  %v2159_v3 = vadd.f32 %v2153_v63, %v1815_v23 }
 0x893   : > { %v2156_v4 = vadd.f32 %v2572_v2, %v2467_v59  ;;  %2161 = vadd.xlane.f32.xlu1 %v2159_v3 }
 0x895   : > { %v2160_v5 = vadd.f32 %v2156_v4, %v1816_v44 }
 0x897   : > { %2163 = vadd.xlane.f32.xlu0 %v2160_v5 }
 0x91c   : > { %v2162_v6 = vpop.xlane.xlu1 %2161 }
 0x91d   : > { %v2165_v7 = vmul.f32 0.0078125, %v2162_v6 }
 0x91f   : > { %v2167_v8 = vsub.f32 %v2159_v3, %v2165_v7 }
 0x920   : > { %v2164_v9 = vpop.xlane.xlu0 %2163 }
 0x921   : > { %v2166_v10 = vmul.f32 0.0078125, %v2164_v9  ;;  %v2169_v11 = vmul.f32 %v2167_v8, %v2167_v8 }
 0x923   : > { %v2168_v12 = vsub.f32 %v2160_v5, %v2166_v10  ;;  %2171 = vadd.xlane.f32.xlu1 %v2169_v11 }
 0x925   : > { %v2170_v13 = vmul.f32 %v2168_v12, %v2168_v12 }
 0x927   : > { %2173 = vadd.xlane.f32.xlu0 %v2170_v13 }
 0x9ac   : > { %v2172_v14 = vpop.xlane.xlu1 %2171 }
 0x9ad   : > { %v2175_v15 = vmul.f32 0.0078125, %v2172_v14 }
 0x9af   : > { %v2177_v0 = vadd.f32 1e-05, %v2175_v15 }
 0x9b0   : > { %v2174_v16 = vpop.xlane.xlu0 %2173 }
 0x9b1   : > { %2937 = vrsqrt.f32 %v2177_v0  ;;  %v2176_v17 = vmul.f32 0.0078125, %v2174_v16 }
 0x9b3   : > { %v2178_v18 = vadd.f32 1e-05, %v2176_v17 }
 0x9b5   : > { %2939 = vrsqrt.f32 %v2178_v18 }
 0x9be   : > { %v2938_v19 = vpop.eup %2937 }
 0x9bf   : > { %v2181_v21 = vmul.f32 %v2938_v19, %v2167_v8 }
 0x9c1   : > { %v2190_v23 = vmul.f32 %v2484_v20, %v2181_v21 }
 0x9c2   : > { %v2940_v44 = vpop.eup %2939 }
 0x9c3   : > { %v2199_v38 = vadd.f32 %v2485_v22, %v2190_v23  ;;  %v2182_v48 = vmul.f32 %v2940_v44, %v2168_v12 }
 0x9c5   : > { %v2191_v24 = vmul.f32 %v2484_v20, %v2182_v48  ;;  %2201 = vst [vmem:[%s620_s24] sm:$0xff] %v2199_v38 }
 0x9c7   : > { %v2200_v25 = vadd.f32 %v2485_v22, %v2191_v24 }
 0x9c9   : > { %2202 = vst [vmem:[%s620_s24 + $0x8] sm:$0xff] %v2200_v25 }
 0x9ca   : > { %3142 = shalt.err (!%p3139_p10)
}
 0x9cb   : > { %s3143_s14 = scalar_lea.hbm %s3758_s26, 256  ;;  %s3147_s18 = scalar_lea.hbm %s3885_s25, 512 }
 0x9cc   : > { %p3144_p13 = scmp.ne.s32.totalorder %s3758_s26, %s3143_s14  ;;  %p3148_p2 = scmp.lt.s32.totalorder %s3758_s26, %s3885_s25 }
 0x9cd   : > { %p3149_p0 = scmp.lt.s32.totalorder %s3147_s18, %s3143_s14 }
 0x9ce   : > { %p3145_p7 = pnand %p3144_p13, %p3886_p5 }
 0x9cf   : > { %p3150_p1 = por %p3149_p0, %p3148_p2 }
 0x9d0   : > { %p3146_p9 = pneg %p3145_p7 }
 0x9d2   : > { %p3151_p12 = pnand %p3150_p1, %p3146_p9 }
 0x9d4   : > { %3154 = shalt.err (!%p3151_p12)
}
 0x9d5   : > { %s3224_s27 = smov 128   ;;  %s3225_s13 = smov 8  }
 0x9d6   : > { %2739 = dma.vmem_to_hbm [thread:$0]  (%p3886_p5), %s3760_s10, 256, %s3758_s26, %s2204_s1, %s3224_s27, %s3224_s27, %s3225_s13  }
 0x9d7 PF: > { %s3887_s22 = sld [smem:[#allocation20_spill]]  ;;  %p3890_p8 = scmp.ge.s32.totalorder %s3205_s16, 2 }
 0x9d8   : > { %s3888_s19 = sld [smem:[#allocation22_spill]] }
 0x9dd   : > { %s2232_s24 = sand.u32 1, %s3887_s22  }
 0x9de   : > { %p3889_p4 = scmp.ne.s32.totalorder %s3888_s19, 0  ;;  %s2233_s15 = scalar_lea.sflag [#allocation4], %s2232_s24 }
 0x9e0   : > { %p2765_p11 = pnand %p3890_p8, %p3889_p4 }
 0x9e2   : > { %p2766_p3 = pneg %p2765_p11 }
 0x9e4   : > { %3188 = dma.done.wait (%p2766_p3), %s2233_s15, 256  }
 0x9e5   : > { %3190 = vsyncadd (%p2766_p3), %s2233_s15, 4294967040  ;;  %s3891_s16 = sld [smem:[#allocation23_spill]]  ;;  %s3894_s29 = smov %s3197_s30 }
 0x9e6   : > { %s3892_s4 = sld [smem:[#allocation21_spill]] }
 0x9e7   : > { %s3893_s15 = sld [smem:[#allocation24_spill]] }
 0x9eb   : > { %p32_p6 = scmp.ge.s32.totalorder %s3891_s16, 4  }
 0x9ec   : > { %s3895_s30 = smov %s3892_s4 }
 0x9ed   :  { %34 = sbr.rel (!%p32_p6) target bundleno = 19 (0x13), region = 161 }
 0x9f2   :  { %2238 = vsyncpa [#allocation3], 1 }
 0x9f3   :  { %2240 = vsyncpa [#allocation3 + $0x1], 1 }
 0x9f4   :  { %2241 = vsyncpa [#allocation6], 1 }
 0x9f5   :  { %2243 = vsyncpa [#allocation6 + $0x1], 1 }
 0x9f6   :  { %2244 = vsyncpa [#allocation9], 1 }
 0x9f7   :  { %2245 = vsyncpa [#allocation12], 1 }
 0x9f8   :  { %2246 = vsyncpa [#allocation4], 1 }
 0x9f9   :  { %2248 = vsyncpa [#allocation4 + $0x1], 1 }

</bundles_post_ra>
